<compile_context>
chip_gen: v7x
topology: tpu7x:2x2x1
jax: 0.10.0
libtpu: 0.0.40
codegen_flags: <defaults>
</compile_context>

<pallas_src>
import numpy as np
import jax
import jax.numpy as jnp
from jax import lax
from jax.experimental import pallas as pl
from jax.experimental.pallas import tpu as pltpu


def _make_attention_kernel(num_heads, head_dim, compute_dtype):
    H, Dh = num_heads, head_dim
    HD = H * Dh
    hd2 = Dh // 2
    # contract the last dim of both operands (q @ k^T without an explicit .T)
    dn_nt = (((1,), (1,)), ((), ()))

    def kernel(x_ref, wqkv_ref, wo_ref, cos_ref, sin_ref, mask_ref, o_ref):
        S = x_ref.shape[1]

        x = x_ref[0].astype(compute_dtype)              # (S, D)
        w_qkv = wqkv_ref[...]                           # (D, 3*H*Dh), compute dtype

        # Fused full-width QKV projection on the MXU (f32 accumulation).
        qkv = jnp.dot(x, w_qkv, preferred_element_type=jnp.float32)   # (S, 3*HD)
        q = qkv[:, :HD]
        k = qkv[:, HD:2 * HD]
        v = qkv[:, 2 * HD:].astype(compute_dtype)

        # Lane-dense rotary embedding (f32). Head-dim layout is [real | imag]
        # halves per head; the half-swap partner comes from two full-lane
        # rolls + a select, cos/sin are already broadcast/signed to full width.
        cosf = cos_ref[...]                             # (S, HD): [cos | cos] per head
        sinf = sin_ref[...]                             # (S, HD): [-sin | +sin] per head
        lane = lax.broadcasted_iota(jnp.int32, (S, HD), 1)
        first_half = (lane % Dh) < hd2

        def rope(t):
            fwd = pltpu.roll(t, HD - hd2, 1)            # fwd[i] = t[i + hd2]
            bwd = pltpu.roll(t, hd2, 1)                 # bwd[i] = t[i - hd2]
            partner = jnp.where(first_half, fwd, bwd)
            return t * cosf + partner * sinf

        qr = rope(q).astype(compute_dtype)              # 1/sqrt(Dh) folded into wq
        kr = rope(k).astype(compute_dtype)

        mask = mask_ref[...]                            # (S, S) additive mask, f32

        # Per-head attention core. Dh-wide contractions are inherently narrow;
        # keep them as an unrolled in-kernel loop (no per-head grid overhead,
        # softmax stats in f32, EUP reciprocal for the normalization).
        outs = []
        for h in range(H):
            sl = slice(h * Dh, (h + 1) * Dh)
            s = lax.dot_general(qr[:, sl], kr[:, sl], dn_nt,
                                preferred_element_type=jnp.float32)    # (S, S)
            s = s + mask
            s = s - jnp.max(s, axis=-1, keepdims=True)
            p = jnp.exp(s)
            p = p * pl.reciprocal(jnp.sum(p, axis=-1, keepdims=True), approx=True)
            outs.append(jnp.dot(p.astype(compute_dtype), v[:, sl],
                                preferred_element_type=jnp.float32))   # (S, Dh)

        att = jnp.concatenate(outs, axis=-1).astype(compute_dtype)     # (S, H*Dh)

        # Single full-width output projection: (S, H*Dh) x (H*Dh, D).
        out = jnp.dot(att, wo_ref[...], preferred_element_type=jnp.float32)
        o_ref[0] = out.astype(o_ref.dtype)

    return kernel


def attention_pallas(x, wq, wk, wv, wo, cos, sin, mask, num_heads,
                     *, compute_dtype=jnp.float32):
    B, S, D = x.shape
    H = num_heads
    Dh = D // H
    HD = H * Dh

    if mask is None:
        mask = jnp.zeros((S, S), dtype=jnp.float32)

    # Permutation mapping interleaved complex pairs -> [real | imag] halves.
    perm = np.concatenate([np.arange(0, Dh, 2), np.arange(1, Dh, 2)])

    # nn.Linear weight is (out, in); projection is x @ W.T.
    scale = 1.0 / float(Dh) ** 0.5                      # folded into wq columns
    wq_c = (wq.T.reshape(D, H, Dh)[:, :, perm] * scale).reshape(D, HD)
    wk_c = wk.T.reshape(D, H, Dh)[:, :, perm].reshape(D, HD)
    wv_c = wv.T                                         # (D, HD), natural head order
    w_qkv = jnp.concatenate([wq_c, wk_c, wv_c], axis=1).astype(compute_dtype)  # (D, 3*HD)
    wo_c = wo.T.astype(compute_dtype)                   # (HD, D)

    # cos/sin broadcast to full H*Dh width, sin pre-signed per half.
    cosf = jnp.tile(jnp.concatenate([cos, cos], axis=-1), (1, H)).astype(jnp.float32)
    sinf = jnp.tile(jnp.concatenate([-sin, sin], axis=-1), (1, H)).astype(jnp.float32)

    kernel = _make_attention_kernel(H, Dh, compute_dtype)

    grid_spec = pltpu.PrefetchScalarGridSpec(
        num_scalar_prefetch=0,
        grid=(B,),                                      # single parallel axis
        in_specs=[
            pl.BlockSpec((1, S, D), lambda b: (b, 0, 0)),      # x
            pl.BlockSpec((D, 3 * HD), lambda b: (0, 0)),       # fused QKV weight
            pl.BlockSpec((HD, D), lambda b: (0, 0)),           # output weight
            pl.BlockSpec((S, HD), lambda b: (0, 0)),           # cos (broadcast)
            pl.BlockSpec((S, HD), lambda b: (0, 0)),           # sin (signed, broadcast)
            pl.BlockSpec((S, S), lambda b: (0, 0)),            # additive mask
        ],
        out_specs=pl.BlockSpec((1, S, D), lambda b: (b, 0, 0)),
    )

    return pl.pallas_call(
        kernel,
        out_shape=jax.ShapeDtypeStruct((B, S, D), jnp.float32),
        grid_spec=grid_spec,
        compiler_params=pltpu.CompilerParams(
            dimension_semantics=("parallel",),
            vmem_limit_bytes=32 * 1024 * 1024,
        ),
    )(x, w_qkv, wo_c, cosf, sinf, mask)


def attention_reference(x, wq, wk, wv, wo, cos, sin, mask, num_heads):
    """Pure-JAX reference reproducing the PyTorch forward (interleaved RoPE)."""
    B, S, D = x.shape
    H = num_heads
    Dh = D // H
    xq = (x @ wq.T).reshape(B, S, H, Dh)
    xk = (x @ wk.T).reshape(B, S, H, Dh)
    xv = (x @ wv.T).reshape(B, S, H, Dh)

    c = cos[None, :, None, :]
    s = sin[None, :, None, :]

    def rope(t):
        te, to = t[..., 0::2], t[..., 1::2]
        re = te * c - to * s
        im = te * s + to * c
        return jnp.stack([re, im], axis=-1).reshape(t.shape)

    xq, xk = rope(xq), rope(xk)
    xq = xq.transpose(0, 2, 1, 3)
    xk = xk.transpose(0, 2, 1, 3)
    xv = xv.transpose(0, 2, 1, 3)
    scores = jnp.einsum("bhqd,bhkd->bhqk", xq, xk) / (Dh ** 0.5)
    if mask is not None:
        scores = scores + mask
    p = jax.nn.softmax(scores, axis=-1)
    out = jnp.einsum("bhqk,bhkd->bhqd", p, xv)
    out = out.transpose(0, 2, 1, 3).reshape(B, S, D)
    return out @ wo.T


if __name__ == "__main__":
    B, S = 2, 8
    num_heads, dim = 8, 128          # module defaults -> head_dim = 16
    head_dim = dim // num_heads

    key = jax.random.PRNGKey(0)
    kx, kq, kk, kv, ko = jax.random.split(key, 5)

    x = jax.random.normal(kx, (B, S, dim), dtype=jnp.float32)
    bound = 1.0 / (dim ** 0.5)       # nn.Linear-style uniform init
    wq = jax.random.uniform(kq, (dim, dim), jnp.float32, -bound, bound)
    wk = jax.random.uniform(kk, (dim, dim), jnp.float32, -bound, bound)
    wv = jax.random.uniform(kv, (dim, dim), jnp.float32, -bound, bound)
    wo = jax.random.uniform(ko, (dim, dim), jnp.float32, -bound, bound)

    # freqs_cis = exp(i * t * theta_j): pass as cos/sin (real view of the complex tensor)
    theta = 1.0 / (10000.0 ** (np.arange(0, head_dim, 2, dtype=np.float32) / head_dim))
    angles = np.outer(np.arange(S, dtype=np.float32), theta)        # (S, head_dim/2)
    cos = jnp.asarray(np.cos(angles), dtype=jnp.float32)
    sin = jnp.asarray(np.sin(angles), dtype=jnp.float32)

    # causal attention mask (additive)
    mask = jnp.where(np.tril(np.ones((S, S), dtype=bool)), 0.0, -1e9).astype(jnp.float32)

    ref = attention_reference(x, wq, wk, wv, wo, cos, sin, mask, num_heads)

    # f32 matmul path (safe default; v5e keeps elementwise math f32 anyway).
    out_f32 = jax.block_until_ready(
        attention_pallas(x, wq, wk, wv, wo, cos, sin, mask, num_heads,
                         compute_dtype=jnp.float32))
    np.testing.assert_allclose(np.asarray(out_f32), np.asarray(ref),
                               rtol=1e-2, atol=1e-2)

    # bf16 matmul-operand path (v6e/v7x: full-rate MXU, half the weight DMA
    # bytes); accumulation and softmax statistics stay in f32.
    out_bf16 = jax.block_until_ready(
        attention_pallas(x, wq, wk, wv, wo, cos, sin, mask, num_heads,
                         compute_dtype=jnp.bfloat16))
    np.testing.assert_allclose(np.asarray(out_bf16), np.asarray(ref),
                               rtol=5e-2, atol=5e-2)

    print("KERNEL_OK")
</pallas_src>

<mosaic_0001>
module attributes {stable_mosaic.version = 11 : i64} {
  func.func @kernel(%arg0: i32, %arg1: memref<1x8x128xf32, #tpu.memory_space<vmem>>, %arg2: memref<128x384xf32, #tpu.memory_space<vmem>>, %arg3: memref<128x128xf32, #tpu.memory_space<vmem>>, %arg4: memref<8x128xf32, #tpu.memory_space<vmem>>, %arg5: memref<8x128xf32, #tpu.memory_space<vmem>>, %arg6: memref<8x8xf32, #tpu.memory_space<vmem>>, %arg7: memref<1x8x128xf32, #tpu.memory_space<vmem>>) attributes {dimension_semantics = [#tpu.dimension_semantics<parallel>], iteration_bounds = array<i64: 2>, scalar_prefetch = 0 : i64, scratch_operands = 0 : i64, tpu.core_type = #tpu.core_type<tc>, window_params = [{transform_indices = @transform_0, window_bounds = array<i64: 1, 8, 128>}, {pipeline_mode = #tpu.pipeline_mode<synchronous>, transform_indices = @transform_1, window_bounds = array<i64: 128, 384>}, {pipeline_mode = #tpu.pipeline_mode<synchronous>, transform_indices = @transform_2, window_bounds = array<i64: 128, 128>}, {pipeline_mode = #tpu.pipeline_mode<synchronous>, transform_indices = @transform_3, window_bounds = array<i64: 8, 128>}, {pipeline_mode = #tpu.pipeline_mode<synchronous>, transform_indices = @transform_4, window_bounds = array<i64: 8, 128>}, {pipeline_mode = #tpu.pipeline_mode<synchronous>, transform_indices = @transform_5, window_bounds = array<i64: 8, 8>}, {transform_indices = @transform_6, window_bounds = array<i64: 1, 8, 128>}]} {
    %c0 = arith.constant 0 : index
    %c0_0 = arith.constant 0 : index
    %c0_1 = arith.constant 0 : index
    %0 = vector.load %arg1[%c0, %c0_0, %c0_1] : memref<1x8x128xf32, #tpu.memory_space<vmem>>, vector<1x8x128xf32>
    %1 = vector.shape_cast %0 : vector<1x8x128xf32> to vector<8x128xf32>
    %c0_2 = arith.constant 0 : index
    %c0_3 = arith.constant 0 : index
    %2 = vector.load %arg2[%c0_2, %c0_3] : memref<128x384xf32, #tpu.memory_space<vmem>>, vector<128x384xf32>
    %cst = arith.constant dense<0.000000e+00> : vector<8x384xf32>
    %3 = tpu.matmul %1, %2, %cst {dimension_numbers = #tpu.dot_dimension_numbers<[1], [0], [0], [1], [0, 0, 1, 1], [], []>} : vector<8x128xf32>, vector<128x384xf32>, vector<8x384xf32> -> vector<8x384xf32>
    %4 = vector.extract_strided_slice %3 {offsets = [0, 0], sizes = [8, 128], strides = [1, 1]} : vector<8x384xf32> to vector<8x128xf32>
    %5 = vector.extract_strided_slice %3 {offsets = [0, 128], sizes = [8, 128], strides = [1, 1]} : vector<8x384xf32> to vector<8x128xf32>
    %6 = vector.extract_strided_slice %3 {offsets = [0, 256], sizes = [8, 128], strides = [1, 1]} : vector<8x384xf32> to vector<8x128xf32>
    %c0_4 = arith.constant 0 : index
    %c0_5 = arith.constant 0 : index
    %7 = vector.load %arg4[%c0_4, %c0_5] : memref<8x128xf32, #tpu.memory_space<vmem>>, vector<8x128xf32>
    %c0_6 = arith.constant 0 : index
    %c0_7 = arith.constant 0 : index
    %8 = vector.load %arg5[%c0_6, %c0_7] : memref<8x128xf32, #tpu.memory_space<vmem>>, vector<8x128xf32>
    %9 = tpu.iota {dimensions = array<i32: 1>} : vector<8x128xi32>
    %c16_i32 = arith.constant 16 : i32
    %c0_i32 = arith.constant 0 : i32
    %10 = arith.cmpi eq, %c16_i32, %c0_i32 : i32
    %c1_i32 = arith.constant 1 : i32
    %11 = arith.select %10, %c1_i32, %c16_i32 : i32
    %12 = vector.broadcast %11 : i32 to vector<8x128xi32>
    %13 = arith.remsi %9, %12 : vector<8x128xi32>
    %c0_i32_8 = arith.constant 0 : i32
    %14 = vector.broadcast %c0_i32_8 : i32 to vector<8x128xi32>
    %15 = arith.cmpi ne, %13, %14 : vector<8x128xi32>
    %c0_i32_9 = arith.constant 0 : i32
    %16 = vector.broadcast %c0_i32_9 : i32 to vector<8x128xi32>
    %17 = arith.cmpi slt, %13, %16 : vector<8x128xi32>
    %c0_i32_10 = arith.constant 0 : i32
    %18 = arith.cmpi slt, %11, %c0_i32_10 : i32
    %19 = vector.broadcast %18 : i1 to vector<8x128xi1>
    %20 = vector.broadcast %19 : vector<8x128xi1> to vector<8x128xi1>
    %21 = arith.xori %17, %20 : vector<8x128xi1>
    %22 = arith.andi %21, %15 : vector<8x128xi1>
    %23 = vector.broadcast %11 : i32 to vector<8x128xi32>
    %24 = arith.addi %13, %23 : vector<8x128xi32>
    %25 = arith.select %22, %24, %13 : vector<8x128xi1>, vector<8x128xi32>
    %c8_i32 = arith.constant 8 : i32
    %26 = vector.broadcast %c8_i32 : i32 to vector<8x128xi32>
    %27 = arith.cmpi slt, %25, %26 : vector<8x128xi32>
    %c120_i32 = arith.constant 120 : i32
    %28 = tpu.dynamic_rotate %4 by %c120_i32 dim 1 : vector<8x128xf32>, i32 -> vector<8x128xf32>
    %c8_i32_11 = arith.constant 8 : i32
    %29 = tpu.dynamic_rotate %4 by %c8_i32_11 dim 1 : vector<8x128xf32>, i32 -> vector<8x128xf32>
    %30 = arith.select %27, %28, %29 : vector<8x128xi1>, vector<8x128xf32>
    %31 = arith.mulf %4, %7 : vector<8x128xf32>
    %32 = arith.mulf %30, %8 : vector<8x128xf32>
    %33 = arith.addf %31, %32 : vector<8x128xf32>
    %c120_i32_12 = arith.constant 120 : i32
    %34 = tpu.dynamic_rotate %5 by %c120_i32_12 dim 1 : vector<8x128xf32>, i32 -> vector<8x128xf32>
    %c8_i32_13 = arith.constant 8 : i32
    %35 = tpu.dynamic_rotate %5 by %c8_i32_13 dim 1 : vector<8x128xf32>, i32 -> vector<8x128xf32>
    %36 = arith.select %27, %34, %35 : vector<8x128xi1>, vector<8x128xf32>
    %37 = arith.mulf %5, %7 : vector<8x128xf32>
    %38 = arith.mulf %36, %8 : vector<8x128xf32>
    %39 = arith.addf %37, %38 : vector<8x128xf32>
    %c0_14 = arith.constant 0 : index
    %c0_15 = arith.constant 0 : index
    %40 = vector.load %arg6[%c0_14, %c0_15] : memref<8x8xf32, #tpu.memory_space<vmem>>, vector<8x8xf32>
    %41 = vector.extract_strided_slice %33 {offsets = [0, 0], sizes = [8, 16], strides = [1, 1]} : vector<8x128xf32> to vector<8x16xf32>
    %42 = vector.extract_strided_slice %39 {offsets = [0, 0], sizes = [8, 16], strides = [1, 1]} : vector<8x128xf32> to vector<8x16xf32>
    %cst_16 = arith.constant dense<0.000000e+00> : vector<8x8xf32>
    %43 = tpu.matmul %41, %42, %cst_16 {dimension_numbers = #tpu.dot_dimension_numbers<[1], [1], [0], [0], [0, 0, 1, 0], [], []>} : vector<8x16xf32>, vector<8x16xf32>, vector<8x8xf32> -> vector<8x8xf32>
    %44 = arith.addf %43, %40 : vector<8x8xf32>
    %cst_17 = arith.constant dense<0xFF800000> : vector<8xf32>
    %45 = vector.multi_reduction <maximumf>, %44, %cst_17 [1] : vector<8x8xf32> to vector<8xf32>
    %46 = vector.shape_cast %45 : vector<8xf32> to vector<8x1xf32>
    %47 = vector.broadcast %46 : vector<8x1xf32> to vector<8x8xf32>
    %48 = arith.subf %44, %47 : vector<8x8xf32>
    %49 = math.exp %48 : vector<8x8xf32>
    %cst_18 = arith.constant dense<0.000000e+00> : vector<8xf32>
    %50 = vector.multi_reduction <add>, %49, %cst_18 [1] : vector<8x8xf32> to vector<8xf32>
    %51 = vector.shape_cast %50 : vector<8xf32> to vector<8x1xf32>
    %52 = tpu.reciprocal %51 {approx = true} : vector<8x1xf32> -> vector<8x1xf32>
    %53 = vector.broadcast %52 : vector<8x1xf32> to vector<8x8xf32>
    %54 = arith.mulf %49, %53 : vector<8x8xf32>
    %55 = vector.extract_strided_slice %6 {offsets = [0, 0], sizes = [8, 16], strides = [1, 1]} : vector<8x128xf32> to vector<8x16xf32>
    %cst_19 = arith.constant dense<0.000000e+00> : vector<8x16xf32>
    %56 = tpu.matmul %54, %55, %cst_19 {dimension_numbers = #tpu.dot_dimension_numbers<[1], [0], [0], [1], [0, 0, 1, 1], [], []>} : vector<8x8xf32>, vector<8x16xf32>, vector<8x16xf32> -> vector<8x16xf32>
    %57 = vector.extract_strided_slice %33 {offsets = [0, 16], sizes = [8, 16], strides = [1, 1]} : vector<8x128xf32> to vector<8x16xf32>
    %58 = vector.extract_strided_slice %39 {offsets = [0, 16], sizes = [8, 16], strides = [1, 1]} : vector<8x128xf32> to vector<8x16xf32>
    %cst_20 = arith.constant dense<0.000000e+00> : vector<8x8xf32>
    %59 = tpu.matmul %57, %58, %cst_20 {dimension_numbers = #tpu.dot_dimension_numbers<[1], [1], [0], [0], [0, 0, 1, 0], [], []>} : vector<8x16xf32>, vector<8x16xf32>, vector<8x8xf32> -> vector<8x8xf32>
    %60 = arith.addf %59, %40 : vector<8x8xf32>
    %cst_21 = arith.constant dense<0xFF800000> : vector<8xf32>
    %61 = vector.multi_reduction <maximumf>, %60, %cst_21 [1] : vector<8x8xf32> to vector<8xf32>
    %62 = vector.shape_cast %61 : vector<8xf32> to vector<8x1xf32>
    %63 = vector.broadcast %62 : vector<8x1xf32> to vector<8x8xf32>
    %64 = arith.subf %60, %63 : vector<8x8xf32>
    %65 = math.exp %64 : vector<8x8xf32>
    %cst_22 = arith.constant dense<0.000000e+00> : vector<8xf32>
    %66 = vector.multi_reduction <add>, %65, %cst_22 [1] : vector<8x8xf32> to vector<8xf32>
    %67 = vector.shape_cast %66 : vector<8xf32> to vector<8x1xf32>
    %68 = tpu.reciprocal %67 {approx = true} : vector<8x1xf32> -> vector<8x1xf32>
    %69 = vector.broadcast %68 : vector<8x1xf32> to vector<8x8xf32>
    %70 = arith.mulf %65, %69 : vector<8x8xf32>
    %71 = vector.extract_strided_slice %6 {offsets = [0, 16], sizes = [8, 16], strides = [1, 1]} : vector<8x128xf32> to vector<8x16xf32>
    %cst_23 = arith.constant dense<0.000000e+00> : vector<8x16xf32>
    %72 = tpu.matmul %70, %71, %cst_23 {dimension_numbers = #tpu.dot_dimension_numbers<[1], [0], [0], [1], [0, 0, 1, 1], [], []>} : vector<8x8xf32>, vector<8x16xf32>, vector<8x16xf32> -> vector<8x16xf32>
    %73 = vector.extract_strided_slice %33 {offsets = [0, 32], sizes = [8, 16], strides = [1, 1]} : vector<8x128xf32> to vector<8x16xf32>
    %74 = vector.extract_strided_slice %39 {offsets = [0, 32], sizes = [8, 16], strides = [1, 1]} : vector<8x128xf32> to vector<8x16xf32>
    %cst_24 = arith.constant dense<0.000000e+00> : vector<8x8xf32>
    %75 = tpu.matmul %73, %74, %cst_24 {dimension_numbers = #tpu.dot_dimension_numbers<[1], [1], [0], [0], [0, 0, 1, 0], [], []>} : vector<8x16xf32>, vector<8x16xf32>, vector<8x8xf32> -> vector<8x8xf32>
    %76 = arith.addf %75, %40 : vector<8x8xf32>
    %cst_25 = arith.constant dense<0xFF800000> : vector<8xf32>
    %77 = vector.multi_reduction <maximumf>, %76, %cst_25 [1] : vector<8x8xf32> to vector<8xf32>
    %78 = vector.shape_cast %77 : vector<8xf32> to vector<8x1xf32>
    %79 = vector.broadcast %78 : vector<8x1xf32> to vector<8x8xf32>
    %80 = arith.subf %76, %79 : vector<8x8xf32>
    %81 = math.exp %80 : vector<8x8xf32>
    %cst_26 = arith.constant dense<0.000000e+00> : vector<8xf32>
    %82 = vector.multi_reduction <add>, %81, %cst_26 [1] : vector<8x8xf32> to vector<8xf32>
    %83 = vector.shape_cast %82 : vector<8xf32> to vector<8x1xf32>
    %84 = tpu.reciprocal %83 {approx = true} : vector<8x1xf32> -> vector<8x1xf32>
    %85 = vector.broadcast %84 : vector<8x1xf32> to vector<8x8xf32>
    %86 = arith.mulf %81, %85 : vector<8x8xf32>
    %87 = vector.extract_strided_slice %6 {offsets = [0, 32], sizes = [8, 16], strides = [1, 1]} : vector<8x128xf32> to vector<8x16xf32>
    %cst_27 = arith.constant dense<0.000000e+00> : vector<8x16xf32>
    %88 = tpu.matmul %86, %87, %cst_27 {dimension_numbers = #tpu.dot_dimension_numbers<[1], [0], [0], [1], [0, 0, 1, 1], [], []>} : vector<8x8xf32>, vector<8x16xf32>, vector<8x16xf32> -> vector<8x16xf32>
    %89 = vector.extract_strided_slice %33 {offsets = [0, 48], sizes = [8, 16], strides = [1, 1]} : vector<8x128xf32> to vector<8x16xf32>
    %90 = vector.extract_strided_slice %39 {offsets = [0, 48], sizes = [8, 16], strides = [1, 1]} : vector<8x128xf32> to vector<8x16xf32>
    %cst_28 = arith.constant dense<0.000000e+00> : vector<8x8xf32>
    %91 = tpu.matmul %89, %90, %cst_28 {dimension_numbers = #tpu.dot_dimension_numbers<[1], [1], [0], [0], [0, 0, 1, 0], [], []>} : vector<8x16xf32>, vector<8x16xf32>, vector<8x8xf32> -> vector<8x8xf32>
    %92 = arith.addf %91, %40 : vector<8x8xf32>
    %cst_29 = arith.constant dense<0xFF800000> : vector<8xf32>
    %93 = vector.multi_reduction <maximumf>, %92, %cst_29 [1] : vector<8x8xf32> to vector<8xf32>
    %94 = vector.shape_cast %93 : vector<8xf32> to vector<8x1xf32>
    %95 = vector.broadcast %94 : vector<8x1xf32> to vector<8x8xf32>
    %96 = arith.subf %92, %95 : vector<8x8xf32>
    %97 = math.exp %96 : vector<8x8xf32>
    %cst_30 = arith.constant dense<0.000000e+00> : vector<8xf32>
    %98 = vector.multi_reduction <add>, %97, %cst_30 [1] : vector<8x8xf32> to vector<8xf32>
    %99 = vector.shape_cast %98 : vector<8xf32> to vector<8x1xf32>
    %100 = tpu.reciprocal %99 {approx = true} : vector<8x1xf32> -> vector<8x1xf32>
    %101 = vector.broadcast %100 : vector<8x1xf32> to vector<8x8xf32>
    %102 = arith.mulf %97, %101 : vector<8x8xf32>
    %103 = vector.extract_strided_slice %6 {offsets = [0, 48], sizes = [8, 16], strides = [1, 1]} : vector<8x128xf32> to vector<8x16xf32>
    %cst_31 = arith.constant dense<0.000000e+00> : vector<8x16xf32>
    %104 = tpu.matmul %102, %103, %cst_31 {dimension_numbers = #tpu.dot_dimension_numbers<[1], [0], [0], [1], [0, 0, 1, 1], [], []>} : vector<8x8xf32>, vector<8x16xf32>, vector<8x16xf32> -> vector<8x16xf32>
    %105 = vector.extract_strided_slice %33 {offsets = [0, 64], sizes = [8, 16], strides = [1, 1]} : vector<8x128xf32> to vector<8x16xf32>
    %106 = vector.extract_strided_slice %39 {offsets = [0, 64], sizes = [8, 16], strides = [1, 1]} : vector<8x128xf32> to vector<8x16xf32>
    %cst_32 = arith.constant dense<0.000000e+00> : vector<8x8xf32>
    %107 = tpu.matmul %105, %106, %cst_32 {dimension_numbers = #tpu.dot_dimension_numbers<[1], [1], [0], [0], [0, 0, 1, 0], [], []>} : vector<8x16xf32>, vector<8x16xf32>, vector<8x8xf32> -> vector<8x8xf32>
    %108 = arith.addf %107, %40 : vector<8x8xf32>
    %cst_33 = arith.constant dense<0xFF800000> : vector<8xf32>
    %109 = vector.multi_reduction <maximumf>, %108, %cst_33 [1] : vector<8x8xf32> to vector<8xf32>
    %110 = vector.shape_cast %109 : vector<8xf32> to vector<8x1xf32>
    %111 = vector.broadcast %110 : vector<8x1xf32> to vector<8x8xf32>
    %112 = arith.subf %108, %111 : vector<8x8xf32>
    %113 = math.exp %112 : vector<8x8xf32>
    %cst_34 = arith.constant dense<0.000000e+00> : vector<8xf32>
    %114 = vector.multi_reduction <add>, %113, %cst_34 [1] : vector<8x8xf32> to vector<8xf32>
    %115 = vector.shape_cast %114 : vector<8xf32> to vector<8x1xf32>
    %116 = tpu.reciprocal %115 {approx = true} : vector<8x1xf32> -> vector<8x1xf32>
    %117 = vector.broadcast %116 : vector<8x1xf32> to vector<8x8xf32>
    %118 = arith.mulf %113, %117 : vector<8x8xf32>
    %119 = vector.extract_strided_slice %6 {offsets = [0, 64], sizes = [8, 16], strides = [1, 1]} : vector<8x128xf32> to vector<8x16xf32>
    %cst_35 = arith.constant dense<0.000000e+00> : vector<8x16xf32>
    %120 = tpu.matmul %118, %119, %cst_35 {dimension_numbers = #tpu.dot_dimension_numbers<[1], [0], [0], [1], [0, 0, 1, 1], [], []>} : vector<8x8xf32>, vector<8x16xf32>, vector<8x16xf32> -> vector<8x16xf32>
    %121 = vector.extract_strided_slice %33 {offsets = [0, 80], sizes = [8, 16], strides = [1, 1]} : vector<8x128xf32> to vector<8x16xf32>
    %122 = vector.extract_strided_slice %39 {offsets = [0, 80], sizes = [8, 16], strides = [1, 1]} : vector<8x128xf32> to vector<8x16xf32>
    %cst_36 = arith.constant dense<0.000000e+00> : vector<8x8xf32>
    %123 = tpu.matmul %121, %122, %cst_36 {dimension_numbers = #tpu.dot_dimension_numbers<[1], [1], [0], [0], [0, 0, 1, 0], [], []>} : vector<8x16xf32>, vector<8x16xf32>, vector<8x8xf32> -> vector<8x8xf32>
    %124 = arith.addf %123, %40 : vector<8x8xf32>
    %cst_37 = arith.constant dense<0xFF800000> : vector<8xf32>
    %125 = vector.multi_reduction <maximumf>, %124, %cst_37 [1] : vector<8x8xf32> to vector<8xf32>
    %126 = vector.shape_cast %125 : vector<8xf32> to vector<8x1xf32>
    %127 = vector.broadcast %126 : vector<8x1xf32> to vector<8x8xf32>
    %128 = arith.subf %124, %127 : vector<8x8xf32>
    %129 = math.exp %128 : vector<8x8xf32>
    %cst_38 = arith.constant dense<0.000000e+00> : vector<8xf32>
    %130 = vector.multi_reduction <add>, %129, %cst_38 [1] : vector<8x8xf32> to vector<8xf32>
    %131 = vector.shape_cast %130 : vector<8xf32> to vector<8x1xf32>
    %132 = tpu.reciprocal %131 {approx = true} : vector<8x1xf32> -> vector<8x1xf32>
    %133 = vector.broadcast %132 : vector<8x1xf32> to vector<8x8xf32>
    %134 = arith.mulf %129, %133 : vector<8x8xf32>
    %135 = vector.extract_strided_slice %6 {offsets = [0, 80], sizes = [8, 16], strides = [1, 1]} : vector<8x128xf32> to vector<8x16xf32>
    %cst_39 = arith.constant dense<0.000000e+00> : vector<8x16xf32>
    %136 = tpu.matmul %134, %135, %cst_39 {dimension_numbers = #tpu.dot_dimension_numbers<[1], [0], [0], [1], [0, 0, 1, 1], [], []>} : vector<8x8xf32>, vector<8x16xf32>, vector<8x16xf32> -> vector<8x16xf32>
    %137 = vector.extract_strided_slice %33 {offsets = [0, 96], sizes = [8, 16], strides = [1, 1]} : vector<8x128xf32> to vector<8x16xf32>
    %138 = vector.extract_strided_slice %39 {offsets = [0, 96], sizes = [8, 16], strides = [1, 1]} : vector<8x128xf32> to vector<8x16xf32>
    %cst_40 = arith.constant dense<0.000000e+00> : vector<8x8xf32>
    %139 = tpu.matmul %137, %138, %cst_40 {dimension_numbers = #tpu.dot_dimension_numbers<[1], [1], [0], [0], [0, 0, 1, 0], [], []>} : vector<8x16xf32>, vector<8x16xf32>, vector<8x8xf32> -> vector<8x8xf32>
    %140 = arith.addf %139, %40 : vector<8x8xf32>
    %cst_41 = arith.constant dense<0xFF800000> : vector<8xf32>
    %141 = vector.multi_reduction <maximumf>, %140, %cst_41 [1] : vector<8x8xf32> to vector<8xf32>
    %142 = vector.shape_cast %141 : vector<8xf32> to vector<8x1xf32>
    %143 = vector.broadcast %142 : vector<8x1xf32> to vector<8x8xf32>
    %144 = arith.subf %140, %143 : vector<8x8xf32>
    %145 = math.exp %144 : vector<8x8xf32>
    %cst_42 = arith.constant dense<0.000000e+00> : vector<8xf32>
    %146 = vector.multi_reduction <add>, %145, %cst_42 [1] : vector<8x8xf32> to vector<8xf32>
    %147 = vector.shape_cast %146 : vector<8xf32> to vector<8x1xf32>
    %148 = tpu.reciprocal %147 {approx = true} : vector<8x1xf32> -> vector<8x1xf32>
    %149 = vector.broadcast %148 : vector<8x1xf32> to vector<8x8xf32>
    %150 = arith.mulf %145, %149 : vector<8x8xf32>
    %151 = vector.extract_strided_slice %6 {offsets = [0, 96], sizes = [8, 16], strides = [1, 1]} : vector<8x128xf32> to vector<8x16xf32>
    %cst_43 = arith.constant dense<0.000000e+00> : vector<8x16xf32>
    %152 = tpu.matmul %150, %151, %cst_43 {dimension_numbers = #tpu.dot_dimension_numbers<[1], [0], [0], [1], [0, 0, 1, 1], [], []>} : vector<8x8xf32>, vector<8x16xf32>, vector<8x16xf32> -> vector<8x16xf32>
    %153 = vector.extract_strided_slice %33 {offsets = [0, 112], sizes = [8, 16], strides = [1, 1]} : vector<8x128xf32> to vector<8x16xf32>
    %154 = vector.extract_strided_slice %39 {offsets = [0, 112], sizes = [8, 16], strides = [1, 1]} : vector<8x128xf32> to vector<8x16xf32>
    %cst_44 = arith.constant dense<0.000000e+00> : vector<8x8xf32>
    %155 = tpu.matmul %153, %154, %cst_44 {dimension_numbers = #tpu.dot_dimension_numbers<[1], [1], [0], [0], [0, 0, 1, 0], [], []>} : vector<8x16xf32>, vector<8x16xf32>, vector<8x8xf32> -> vector<8x8xf32>
    %156 = arith.addf %155, %40 : vector<8x8xf32>
    %cst_45 = arith.constant dense<0xFF800000> : vector<8xf32>
    %157 = vector.multi_reduction <maximumf>, %156, %cst_45 [1] : vector<8x8xf32> to vector<8xf32>
    %158 = vector.shape_cast %157 : vector<8xf32> to vector<8x1xf32>
    %159 = vector.broadcast %158 : vector<8x1xf32> to vector<8x8xf32>
    %160 = arith.subf %156, %159 : vector<8x8xf32>
    %161 = math.exp %160 : vector<8x8xf32>
    %cst_46 = arith.constant dense<0.000000e+00> : vector<8xf32>
    %162 = vector.multi_reduction <add>, %161, %cst_46 [1] : vector<8x8xf32> to vector<8xf32>
    %163 = vector.shape_cast %162 : vector<8xf32> to vector<8x1xf32>
    %164 = tpu.reciprocal %163 {approx = true} : vector<8x1xf32> -> vector<8x1xf32>
    %165 = vector.broadcast %164 : vector<8x1xf32> to vector<8x8xf32>
    %166 = arith.mulf %161, %165 : vector<8x8xf32>
    %167 = vector.extract_strided_slice %6 {offsets = [0, 112], sizes = [8, 16], strides = [1, 1]} : vector<8x128xf32> to vector<8x16xf32>
    %cst_47 = arith.constant dense<0.000000e+00> : vector<8x16xf32>
    %168 = tpu.matmul %166, %167, %cst_47 {dimension_numbers = #tpu.dot_dimension_numbers<[1], [0], [0], [1], [0, 0, 1, 1], [], []>} : vector<8x8xf32>, vector<8x16xf32>, vector<8x16xf32> -> vector<8x16xf32>
    %169 = tpu.concatenate %56, %72, %88, %104, %120, %136, %152, %168 in 1 : vector<8x16xf32>, vector<8x16xf32>, vector<8x16xf32>, vector<8x16xf32>, vector<8x16xf32>, vector<8x16xf32>, vector<8x16xf32>, vector<8x16xf32> -> vector<8x128xf32>
    %c0_48 = arith.constant 0 : index
    %c0_49 = arith.constant 0 : index
    %170 = vector.load %arg3[%c0_48, %c0_49] : memref<128x128xf32, #tpu.memory_space<vmem>>, vector<128x128xf32>
    %cst_50 = arith.constant dense<0.000000e+00> : vector<8x128xf32>
    %171 = tpu.matmul %169, %170, %cst_50 {dimension_numbers = #tpu.dot_dimension_numbers<[1], [0], [0], [1], [0, 0, 1, 1], [], []>} : vector<8x128xf32>, vector<128x128xf32>, vector<8x128xf32> -> vector<8x128xf32>
    %c0_51 = arith.constant 0 : index
    %c0_52 = arith.constant 0 : index
    %c0_53 = arith.constant 0 : index
    %172 = vector.load %arg7[%c0_51, %c0_52, %c0_53] : memref<1x8x128xf32, #tpu.memory_space<vmem>>, vector<1x8x128xf32>
    %173 = vector.shape_cast %172 : vector<1x8x128xf32> to vector<8x128xf32>
    %174 = vector.shape_cast %171 : vector<8x128xf32> to vector<1x8x128xf32>
    tpu.vector_store %arg7[%c0_51, %c0_52, %c0_53], %174 {strides = array<i32>} : memref<1x8x128xf32, #tpu.memory_space<vmem>>, vector<1x8x128xf32>,
    return
  }
  func.func @transform_0(%arg0: i32) -> (i32, i32, i32) {
    %c0_i32 = arith.constant 0 : i32
    %c0_i32_0 = arith.constant 0 : i32
    %c0_i32_1 = arith.constant 0 : i32
    return %arg0, %c0_i32, %c0_i32_0 : i32, i32, i32
  }
  func.func @transform_1(%arg0: i32) -> (i32, i32) {
    %c0_i32 = arith.constant 0 : i32
    %c0_i32_0 = arith.constant 0 : i32
    %c0_i32_1 = arith.constant 0 : i32
    return %c0_i32, %c0_i32_0 : i32, i32
  }
  func.func @transform_2(%arg0: i32) -> (i32, i32) {
    %c0_i32 = arith.constant 0 : i32
    %c0_i32_0 = arith.constant 0 : i32
    %c0_i32_1 = arith.constant 0 : i32
    return %c0_i32, %c0_i32_0 : i32, i32
  }
  func.func @transform_3(%arg0: i32) -> (i32, i32) {
    %c0_i32 = arith.constant 0 : i32
    %c0_i32_0 = arith.constant 0 : i32
    %c0_i32_1 = arith.constant 0 : i32
    return %c0_i32, %c0_i32_0 : i32, i32
  }
  func.func @transform_4(%arg0: i32) -> (i32, i32) {
    %c0_i32 = arith.constant 0 : i32
    %c0_i32_0 = arith.constant 0 : i32
    %c0_i32_1 = arith.constant 0 : i32
    return %c0_i32, %c0_i32_0 : i32, i32
  }
  func.func @transform_5(%arg0: i32) -> (i32, i32) {
    %c0_i32 = arith.constant 0 : i32
    %c0_i32_0 = arith.constant 0 : i32
    %c0_i32_1 = arith.constant 0 : i32
    return %c0_i32, %c0_i32_0 : i32, i32
  }
  func.func @transform_6(%arg0: i32) -> (i32, i32, i32) {
    %c0_i32 = arith.constant 0 : i32
    %c0_i32_0 = arith.constant 0 : i32
    %c0_i32_1 = arith.constant 0 : i32
    return %arg0, %c0_i32, %c0_i32_0 : i32, i32, i32
  }
}

</mosaic_0001>

<bundles_post_ra>
// kernel: tpu_custom_call.1
= control target key start
LH: loop header
LB: loop body
LE: loop exit
PB: predicated region body
PF: predicated region fallthrough
CT: control target
= control target key end

     0   :  { %s3252_s0 = inlined_call_operand.hbm [shape: f32[2,8,128], index: 0, kind: input, shape index: {}]   ;;  %s3253_s1 = inlined_call_operand.hbm [shape: f32[128,384], index: 1, kind: input, shape index: {}]   ;;  %s3254_s2 = inlined_call_operand.hbm [shape: f32[128,128], index: 2, kind: input, shape index: {}]   ;;  %s3255_s3 = inlined_call_operand.vmem [shape: f32[8,128], index: 3, kind: input, shape index: {}]   ;;  %s3256_s4 = inlined_call_operand.hbm [shape: f32[8,128], index: 4, kind: input, shape index: {}]   ;;  %s3257_s5 = inlined_call_operand.vmem [shape: f32[8,8], index: 5, kind: input, shape index: {}]   ;;  %s3258_s6 = inlined_call_operand.hbm [shape: f32[2,8,128], index: 6, kind: output, shape index: {}]  }
   0x1   :  { %3262 = sst [smem:[#allocation15_spill]] %s3253_s1 }
   0x2   :  { %11 = vsyncpa [#allocation3], 0 }
   0x3   :  { %13 = vsyncpa [#allocation3 + $0x1], 0 }
   0x4   :  { %14 = vsyncpa [#allocation6], 0 }
   0x5   :  { %15 = vsyncpa [#allocation9], 0 }
   0x6   :  { %16 = vsyncpa [#allocation4], 0 }
   0x7   :  { %18 = vsyncpa [#allocation4 + $0x1], 0  ;;  %s2801_s21 = smov 0   ;;  %s2803_s22 = smov 0  }
   0x8   :  { %s2805_s23 = smov 0   ;;  %s2807_s24 = smov 0  }
   0x9 LB: > { %s2822_s25 = sadd.s32 4294967295, %s2743_s24   ;;  %s2092_s26 = sadd.s32 4294967294, %s2743_s24   ;;  %s2743_s24 = sphi %s2807_s24, %s3283_s24   ;;  %s2739_s23 = sphi %s2805_s23, %s3282_s23   ;;  %s2735_s22 = sphi %s2803_s22, %s3281_s22   ;;  %s2731_s21 = sphi %s2801_s21, %s3280_s21  }
   0xa   : > { %p44_p0 = scmp.ne.s32.totalorder %s2735_s22, %s2731_s21  ;;  %p3259_p1 = scmp.eq.s32.totalorder %s2822_s25, 0 }
   0xb   : > { %p179_p3 = scmp.eq.s32.totalorder %s2092_s26, 1  ;;  %p2093_p5 = scmp.ge.s32.totalorder %s2743_s24, 1 }
   0xc   : > { %p2831_p4 = por %p3259_p1, %p44_p0  ;;  %p186_p7 = scmp.lt.s32.totalorder %s2743_s24, 3 }
   0xd   : > { %p2836_p6 = por %p179_p3, %p44_p0  ;;  %s2745_s30 = smov [#allocation5]  }
   0xe   : > { %s3263_s27 = scalar_select %p2831_p4, 1, 0 }
   0xf   : > { %s3264_s28 = scalar_select %p2836_p6, 1, 0 }
  0x10   : > { %p2841_p8 = pnand %p2093_p5, %p186_p7  ;;  %s198_s7 = sshll.u32 %s2745_s30, 4  ;;  %s2845_s7 = int_to_ptr.vmem [resolvable:$true] %s198_s7 }
  0x11   : > { %s2746_s9 = smov [#allocation7]   ;;  %s3267_s1 = sld [smem:[#allocation15_spill]] }
  0x12   : > { %s3265_s29 = scalar_select %p2841_p8, 1, 0 }
  0x13   : > { %p2446_p9 = pneg %p2841_p8  ;;  %s211_s10 = sshll.u32 %s2746_s9, 4  ;;  %s2856_s10 = int_to_ptr.vmem [resolvable:$true] %s211_s10 }
  0x15   : > { %p2852_p11 = pnand %p2446_p9, %p3259_p1 }
  0x17   : > { %s2555_s13 = scalar_lea.hbm %s3267_s1, 6144  ;;  %p2866_p13 = pneg %p2852_p11 }
  0x18   : > { %p2556_p12 = scmp.ne.s32.totalorder %s3267_s1, %s2555_s13  ;;  %p2562_p5 = scmp.lt.u32.totalorder %s2555_s13, %s3267_s1 }
  0x1a   : > { %p2558_p0 = pnand %p2866_p13, %p2556_p12 }
  0x1c   : > { %p2559_p3 = pneg %p2558_p0 }
  0x1e   : > { %p2564_p7 = pnand %p2562_p5, %p2559_p3 }
  0x20   : > { %2567 = shalt.err (!%p2564_p7)
}
  0x21   : > { %s2568_s19 = scalar_lea.vmem %s2845_s7, 6144  ;;  %p2576_p2 = scmp.lt.s32.totalorder %s2845_s7, %s2845_s7 }
  0x22   : > { %p2569_p9 = scmp.ne.s32.totalorder %s2845_s7, %s2568_s19  ;;  %p2577_p6 = scmp.lt.s32.totalorder %s2568_s19, %s2568_s19 }
  0x24   : > { %p2571_p10 = pnand %p2569_p9, %p2866_p13  ;;  %p2578_p12 = por %p2577_p6, %p2576_p2 }
  0x26   : > { %p2572_p1 = pneg %p2571_p10 }
  0x28   : > { %p2579_p0 = pnand %p2578_p12, %p2572_p1 }
  0x2a   : > { %2582 = shalt.err (!%p2579_p0)
}
  0x2b   : > { %s2747_s20 = smov 384   ;;  %s2748_s26 = smov 24  }
  0x2c   : > { %2449 = dma.hbm_to_vmem [thread:$0]  (!%p2852_p11), %s3267_s1, 6144, %s2845_s7, [#allocation6], %s2747_s20, %s2747_s20, %s2748_s26  }
  0x2d   : > { %s2583_s13 = scalar_lea.hbm %s3254_s2, 2048 }
  0x2e   : > { %p2584_p2 = scmp.ne.s32.totalorder %s3254_s2, %s2583_s13  ;;  %p2590_p10 = scmp.lt.u32.totalorder %s2583_s13, %s3254_s2 }
  0x30   : > { %p2586_p1 = pnand %p2584_p2, %p2866_p13 }
  0x32   : > { %p2587_p6 = pneg %p2586_p1 }
  0x34   : > { %p2592_p3 = pnand %p2590_p10, %p2587_p6 }
  0x36   : > { %2595 = shalt.err (!%p2592_p3)
}
  0x37   : > { %s2596_s7 = scalar_lea.vmem %s2856_s10, 2048  ;;  %p2604_p12 = scmp.lt.s32.totalorder %s2856_s10, %s2856_s10 }
  0x38   : > { %p2597_p5 = scmp.ne.s32.totalorder %s2856_s10, %s2596_s7  ;;  %p2605_p0 = scmp.lt.s32.totalorder %s2596_s7, %s2596_s7 }
  0x3a   : > { %p2599_p7 = pnand %p2597_p5, %p2866_p13  ;;  %p2606_p2 = por %p2605_p0, %p2604_p12 }
  0x3c   : > { %p2600_p9 = pneg %p2599_p7 }
  0x3e   : > { %p2607_p1 = pnand %p2606_p2, %p2600_p9 }
  0x40   : > { %2610 = shalt.err (!%p2607_p1)
}
  0x41   : > { %s2749_s19 = smov 128   ;;  %s2750_s20 = smov 8  }
  0x42   : > { %2452 = dma.hbm_to_vmem [thread:$0]  (!%p2852_p11), %s3254_s2, 2048, %s2856_s10, [#allocation6], %s2749_s19, %s2749_s19, %s2750_s20  }
  0x43   : > { %s2751_s9 = smov [#allocation8]   ;;  %s2911_s12 = sadd.s32 1, %s2743_s24  }
  0x44   : > { %s228_s11 = sshll.u32 %s2751_s9, 4  ;;  %s2611_s15 = scalar_lea.hbm %s3256_s4, 128  ;;  %s229_s11 = int_to_ptr.vmem [resolvable:$true] %s228_s11 }
  0x45   : > { %p2612_p6 = scmp.ne.s32.totalorder %s3256_s4, %s2611_s15  ;;  %p2618_p5 = scmp.lt.u32.totalorder %s2611_s15, %s3256_s4 }
  0x47   : > { %p2614_p10 = pnand %p2612_p6, %p2866_p13 }
  0x49   : > { %p2615_p3 = pneg %p2614_p10 }
  0x4b   : > { %p2620_p7 = pnand %p2618_p5, %p2615_p3 }
  0x4d   : > { %2623 = shalt.err (!%p2620_p7)
}
  0x4e   : > { %s2624_s10 = scalar_lea.vmem %s229_s11, 128  ;;  %p2632_p2 = scmp.lt.s32.totalorder %s229_s11, %s229_s11 }
  0x4f   : > { %p2625_p9 = scmp.ne.s32.totalorder %s229_s11, %s2624_s10  ;;  %p2633_p1 = scmp.lt.s32.totalorder %s2624_s10, %s2624_s10 }
  0x51   : > { %p2627_p12 = pnand %p2625_p9, %p2866_p13  ;;  %p2634_p4 = por %p2633_p1, %p2632_p2 }
  0x53   : > { %p2628_p0 = pneg %p2627_p12 }
  0x55   : > { %p2635_p8 = pnand %p2634_p4, %p2628_p0 }
  0x57   : > { %2638 = shalt.err (!%p2635_p8)
}
  0x58   : > { %2455 = dma.hbm_to_vmem [thread:$0]  (!%p2852_p11), %s3256_s4, 128, %s229_s11, [#allocation9]  }
  0x59   : > { %s28_s1 = ssub.s32 %s2743_s24, %s2911_s12  ;;  %s31_s16 = sadd.s32 1, %s2739_s23 }
  0x5a   : > { %p29_p4 = scmp.eq.s32.totalorder %s28_s1, 0  ;;  %p38_p8 = scmp.ne.s32.totalorder %s2739_s23, %s2735_s22 }
  0x5b   : > { %p39_p13 = scmp.eq.s32.totalorder %s2743_s24, 0  ;;  %p2467_p6 = scmp.lt.s32.totalorder %s2743_s24, 2 }
  0x5c   : > { %s2939_s8 = scalar_select %p29_p4, %s2739_s23, %s31_s16  }
  0x5d   : > { %p40_p10 = por %p39_p13, %p38_p8  ;;  %p3269_p3 = scmp.eq.s32.totalorder %s2822_s25, 1 }
  0x5e   : > { %s242_s30 = sand.u32 1, %s2739_s23   ;;  %s2099_s9 = sshll.u32 %s2743_s24, 7 }
  0x5f   : > { %p2943_p5 = por %p3269_p3, %p38_p8  ;;  %s2098_s13 = sshll.u32 %s242_s30, 3 }
  0x60   : > { %s2952_s11 = scalar_lea.hbm %s3252_s0, %s2099_s9  ;;  %s246_s17 = scalar_lea.vmem [#allocation2], %s2098_s13 }
  0x61   : > { %s253_s18 = sshll.u32 %s246_s17, 4  ;;  %p2954_p11 = pnand %p2467_p6, %p40_p10  ;;  %s2958_s18 = int_to_ptr.vmem [resolvable:$true] %s253_s18 }
  0x62   : > { %s243_s10 = scalar_lea.sflag [#allocation3], %s242_s30  ;;  %s2639_s19 = scalar_lea.hbm %s2952_s11, 128 }
  0x63   : > { %p2640_p7 = scmp.ne.s32.totalorder %s2952_s11, %s2639_s19  ;;  %p2641_p9 = pneg %p2954_p11 }
  0x64   : > { %s2644_s16 = scalar_lea.hbm %s3252_s0, 256  ;;  %p2645_p2 = scmp.lt.u32.totalorder %s2952_s11, %s3252_s0 }
  0x65   : > { %p2642_p12 = pnand %p2641_p9, %p2640_p7  ;;  %p2646_p1 = scmp.lt.u32.totalorder %s2644_s16, %s2639_s19 }
  0x66   : > { %p2648_p8 = scmp.lt.u32.totalorder %s2639_s19, %s2952_s11 }
  0x67   : > { %p2643_p0 = pneg %p2642_p12  ;;  %p2647_p4 = por %p2646_p1, %p2645_p2 }
  0x69   : > { %p2649_p13 = por %p2648_p8, %p2647_p4 }
  0x6b   : > { %p2650_p6 = pnand %p2649_p13, %p2643_p0 }
  0x6d   : > { %2653 = shalt.err (!%p2650_p6)
}
  0x6e   : > { %s2654_s30 = scalar_lea.vmem %s2958_s18, 128  ;;  %s2752_s14 = smov [#allocation2]  }
  0x6f   : > { %p2655_p10 = scmp.ne.s32.totalorder %s2958_s18, %s2654_s30  ;;  %s2659_s15 = sshll.u32 %s2752_s14, 4  ;;  %s2660_s15 = int_to_ptr.vmem [resolvable:$false] %s2659_s15 }
  0x70   : > { %s2661_s17 = scalar_lea.vmem %s2660_s15, 256  ;;  %p2662_p12 = scmp.lt.s32.totalorder %s2958_s18, %s2660_s15 }
  0x71   : > { %p2657_p3 = pnand %p2655_p10, %p2641_p9  ;;  %p2663_p2 = scmp.lt.s32.totalorder %s2661_s17, %s2654_s30 }
  0x73   : > { %p2658_p7 = pneg %p2657_p3  ;;  %p2664_p1 = por %p2663_p2, %p2662_p12 }
  0x75   : > { %p2665_p4 = pnand %p2664_p1, %p2658_p7 }
  0x77   : > { %2668 = shalt.err (!%p2665_p4)
}
  0x78   : > { %2459 = dma.hbm_to_vmem [thread:$0]  (!%p2954_p11), %s2952_s11, 128, %s2958_s18, %s243_s10  }
  0x79   : > { %p3272_p0 = scmp.ne.s32.totalorder %s3265_s29, 0 }
  0x7a   : > { %s2988_s19 = sand.u32 (!%p3272_p0), 1, %s2735_s22   ;;  %p3273_p9 = scmp.ne.s32.totalorder (!%p3272_p0), %s3263_s27, 0 }
  0x7b   : > { %262 = sbr.rel (%p3272_p0) target bundleno = 3219 (0xc93), region = 44  ;;  %s2101_s20 = sshll.u32 (!%p3272_p0), %s2988_s19, 3 }
  0x7c   : > { %s265_s1 = scalar_lea.sflag (!%p3272_p0), [#allocation3], %s2988_s19  ;;  %s2994_s16 = scalar_lea.vmem (!%p3272_p0), [#allocation2], %s2101_s20 }
  0x82   : > { %2714 = dma.done.wait (%p3273_p9), %s265_s1, 128  }
  0x83   : > { %2716 = vsyncadd (%p3273_p9), %s265_s1, 4294967168  ;;  %p3274_p11 = scmp.eq.s32.totalorder %s2822_s25, 0 }
  0x85   : > { %2718 = dma.done.wait (%p3274_p11), [#allocation6], 8192   ;;  %p3275_p8 = pmov %p3274_p11 }
  0x87   : > { %2720 = vsyncadd (%p3275_p8), [#allocation6], 4294959104  ;;  %p3276_p13 = pmov %p3275_p8 }
  0x88   : > { %p3277_p6 = pmov %p3275_p8 }
  0x89   : > { %2722 = dma.done.wait (%p3276_p13), [#allocation9], 128  }
  0x8a   : > { %2724 = vsyncadd (%p3277_p6), [#allocation9], 4294967168  ;;  %v2753_v0 = vmov 0.0   ;;  %v311_v1 = vld [vmem:[#allocation5 + $0x8] sm:$0xff]  ;;  %v314_v2 = vld [vmem:[#allocation5 + $0x20] sm:$0xff]  ;;  %v2754_v53 = vmov 0.0|0.0  }
  0x8b   : > { %422 = vmatprep.mubr.f32.mxu0 %v2753_v0  ;;  %v310_v3 = vld [vmem:[#allocation5] sm:$0xff]  ;;  %v2350_v4 = vpack.c.bf16 %v314_v2, %v311_v1  ;;  %v313_v5 = vld [vmem:[#allocation5 + $0x18] sm:$0xff]  ;;  %v320_v7 = vld [vmem:[#allocation5 + $0x50] sm:$0xff]  ;;  %2382 = vmatprep.subr.bf16.mxu1 %v2754_v53  ;;  %vm2755_vm0 = vmmov 0   ;;  %s2756_s27 = smov 120   ;;  %s2757_s29 = smov 8  }
  0x8c   : > { %v317_v6 = vld [vmem:[#allocation5 + $0x38] sm:$0xff]  ;;  %v2352_v8 = vpack.c.bf16 %v313_v5, %v310_v3  ;;  %v316_v10 = vld [vmem:[#allocation5 + $0x30] sm:$0xff]  ;;  %v319_v11 = vld [vmem:[#allocation5 + $0x48] sm:$0xff]  ;;  %2232 = vmatprep.mubr.msk.f32.mxu1 %vm2755_vm0, %v2753_v0  ;;  %vm533_vm2 = vcmask 130048   ;;  %vm610_vm3 = vcmask 64512   ;;  %s2758_s9 = smov 112  }
  0x8d   : > { %v2354_v9 = vpack.c.bf16 %v320_v7, %v317_v6  ;;  %v323_v12 = vld [vmem:[#allocation5 + $0x68] sm:$0xff]  ;;  %2351 = vmatprep.subr.bf16.mxu0 %v2350_v4  ;;  %v326_v13 = vld [vmem:[#allocation5 + $0x80] sm:$0xff]  ;;  %v2356_v14 = vpack.c.bf16 %v319_v11, %v316_v10  ;;  %v325_v17 = vld [vmem:[#allocation5 + $0x78] sm:$0xff]  ;;  %s2759_s13 = smov 96   ;;  %s2760_s30 = smov 80   ;;  %vm1880_vm4 = vcmask 261120  }
  0x8e   : > { %2353 = vmatpush1.bf16.msra.mxu0 %v2352_v8  ;;  %v2358_v15 = vpack.c.bf16 %v326_v13, %v323_v12  ;;  %v322_v16 = vld [vmem:[#allocation5 + $0x60] sm:$0xff]  ;;  %v329_v18 = vld [vmem:[#allocation5 + $0x98] sm:$0xff]  ;;  %v332_v19 = vld [vmem:[#allocation5 + $0xb0] sm:$0xff]  ;;  %s2761_s14 = smov 64   ;;  %s2762_s15 = smov 48   ;;  %vm1882_vm5 = vcmask 392192  }
  0x8f   : > { %2355 = vmatprep.subr.bf16.mxu0 %v2354_v9  ;;  %v2360_v20 = vpack.c.bf16 %v325_v17, %v322_v16  ;;  %v2362_v21 = vpack.c.bf16 %v332_v19, %v329_v18  ;;  %v328_v22 = vld [vmem:[#allocation5 + $0x90] sm:$0xff]  ;;  %v331_v23 = vld [vmem:[#allocation5 + $0xa8] sm:$0xff]  ;;  %v338_v25 = vld [vmem:[#allocation5 + $0xe0] sm:$0xff]  ;;  %s2763_s17 = smov 32   ;;  %s2764_s1 = smov 16   ;;  %vm1884_vm6 = vcmask 523264  }
  0x90   : > { %v335_v24 = vld [vmem:[#allocation5 + $0xc8] sm:$0xff]  ;;  %v2364_v26 = vpack.c.bf16 %v331_v23, %v328_v22  ;;  %v334_v28 = vld [vmem:[#allocation5 + $0xc0] sm:$0xff]  ;;  %v337_v29 = vld [vmem:[#allocation5 + $0xd8] sm:$0xff]  ;;  %vm1886_vm7 = vcmask 654336   ;;  %vm1888_vm8 = vcmask 785408   ;;  %vm1890_vm9 = vcmask 916480  }
  0x91   : > { %v2366_v27 = vpack.c.bf16 %v338_v25, %v335_v24  ;;  %v341_v30 = vld [vmem:[#allocation5 + $0xf8] sm:$0xff]  ;;  %v344_v31 = vld [vmem:[#allocation5 + $0x110] sm:$0xff]  ;;  %v2368_v32 = vpack.c.bf16 %v337_v29, %v334_v28  ;;  %v343_v35 = vld [vmem:[#allocation5 + $0x108] sm:$0xff]  ;;  %s1980_s10 = scalar_lea.sflag [#allocation4], %s2988_s19 }
  0x92   : > { %2357 = vmatpush1.bf16.msra.mxu0 %v2356_v14  ;;  %v2370_v33 = vpack.c.bf16 %v344_v31, %v341_v30  ;;  %v340_v34 = vld [vmem:[#allocation5 + $0xf0] sm:$0xff]  ;;  %v347_v36 = vld [vmem:[#allocation5 + $0x128] sm:$0xff]  ;;  %v350_v37 = vld [vmem:[#allocation5 + $0x140] sm:$0xff]  ;;  %v501_v14 = vlaneseq }
  0x93   : > { %2359 = vmatprep.subr.bf16.mxu0 %v2358_v15  ;;  %v2372_v38 = vpack.c.bf16 %v343_v35, %v340_v34  ;;  %v2374_v39 = vpack.c.bf16 %v350_v37, %v347_v36  ;;  %v346_v40 = vld [vmem:[#allocation5 + $0x120] sm:$0xff]  ;;  %v349_v41 = vld [vmem:[#allocation5 + $0x138] sm:$0xff]  ;;  %v356_v43 = vld [vmem:[#allocation5 + $0x170] sm:$0xff] }
  0x94   : > { %v353_v42 = vld [vmem:[#allocation5 + $0x158] sm:$0xff]  ;;  %v2376_v44 = vpack.c.bf16 %v349_v41, %v346_v40  ;;  %v352_v46 = vld [vmem:[#allocation5 + $0x150] sm:$0xff]  ;;  %v355_v47 = vld [vmem:[#allocation5 + $0x168] sm:$0xff]  ;;  %v502_v15 = vand.u32 127, %v501_v14 }
  0x95   : > { %v2378_v45 = vpack.c.bf16 %v356_v43, %v353_v42  ;;  %v2380_v48 = vpack.c.bf16 %v355_v47, %v352_v46  ;;  %v309_v49 = vld [vmem:[%s2994_s16] sm:$0xff]  ;;  %v315_v51 = vld [vmem:[#allocation5 + $0x28] sm:$0xff]  ;;  %v318_v52 = vld [vmem:[#allocation5 + $0x40] sm:$0xff]  ;;  %s308_s16 = scalar_lea.vmem [#allocation10], %s2101_s20 }
  0x96   : > { %2361 = vmatpush1.bf16.msra.mxu0 %v2360_v20  ;;  %v312_v50 = vld [vmem:[#allocation5 + $0x10] sm:$0xff]  ;;  %v321_v55 = vld [vmem:[#allocation5 + $0x58] sm:$0xff]  ;;  %v327_v58 = vld [vmem:[#allocation5 + $0x88] sm:$0xff]  ;;  %v507_v16 = vand.u32 15, %v502_v15 }
  0x97   : > { %2363 = vmatprep.subr.bf16.mxu0 %v2362_v21  ;;  %v2383_v54 = vpack.c.bf16 %v315_v51, %v312_v50  ;;  %v2386_v56 = vpack.c.bf16 %v321_v55, %v318_v52  ;;  %v324_v57 = vld [vmem:[#allocation5 + $0x70] sm:$0xff]  ;;  %v330_v60 = vld [vmem:[#allocation5 + $0xa0] sm:$0xff]  ;;  %v333_v61 = vld [vmem:[#allocation5 + $0xb8] sm:$0xff] }
  0x98   : > { %v2389_v59 = vpack.c.bf16 %v327_v58, %v324_v57  ;;  %v2392_v62 = vpack.c.bf16 %v333_v61, %v330_v60  ;;  %v336_v63 = vld [vmem:[#allocation5 + $0xd0] sm:$0xff]  ;;  %v339_v1 = vld [vmem:[#allocation5 + $0xe8] sm:$0xff]  ;;  %v342_v3 = vld [vmem:[#allocation5 + $0x100] sm:$0xff]  ;;  %vm515_vm1 = vcmp.lt.s32.totalorder %v507_v16, 8 }
  0x99   : > { %2384 = vmatpush3.bf16.msra.mxu1 %v2383_v54  ;;  %v2395_v2 = vpack.c.bf16 %v339_v1, %v336_v63  ;;  %v345_v4 = vld [vmem:[#allocation5 + $0x118] sm:$0xff]  ;;  %v348_v6 = vld [vmem:[#allocation5 + $0x130] sm:$0xff]  ;;  %v351_v7 = vld [vmem:[#allocation5 + $0x148] sm:$0xff] }
  0x9a   : > { %2365 = vmatpush1.bf16.msra.mxu0 %v2364_v26  ;;  %2385 = vmatprep.subr.bf16.mxu1 %v2754_v53  ;;  %v2398_v5 = vpack.c.bf16 %v345_v4, %v342_v3  ;;  %v2401_v8 = vpack.c.bf16 %v351_v7, %v348_v6  ;;  %v354_v9 = vld [vmem:[#allocation5 + $0x160] sm:$0xff]  ;;  %v357_v10 = vld [vmem:[#allocation5 + $0x178] sm:$0xff]  ;;  %v499_v19 = vld [vmem:[%s3255_s3] sm:$0xff] }
  0x9b   : > { %2367 = vmatprep.subr.bf16.mxu0 %v2366_v27  ;;  %v2404_v11 = vpack.c.bf16 %v357_v10, %v354_v9  ;;  %v500_v20 = vld [vmem:[#allocation8] sm:$0xff] }
  0x9d   : > { %2387 = vmatpush3.bf16.msra.mxu1 %v2386_v56 }
  0x9e   : > { %2369 = vmatpush1.bf16.msra.mxu0 %v2368_v32  ;;  %2388 = vmatprep.subr.bf16.mxu1 %v2754_v53 }
  0x9f   : > { %2371 = vmatprep.subr.bf16.mxu0 %v2370_v33  ;;  %v3047_v33 = vld [vmem:[%s3257_s5] sm:$0xff] }
  0xa1   : > { %2390 = vmatpush3.bf16.msra.mxu1 %v2389_v59 }
  0xa2   : > { %2373 = vmatpush1.bf16.msra.mxu0 %v2372_v38  ;;  %2391 = vmatprep.subr.bf16.mxu1 %v2754_v53 }
  0xa3   : > { %2375 = vmatprep.subr.bf16.mxu0 %v2374_v39 }
  0xa5   : > { %2393 = vmatpush3.bf16.msra.mxu1 %v2392_v62 }
  0xa6   : > { %2377 = vmatpush1.bf16.msra.mxu0 %v2376_v44  ;;  %2394 = vmatprep.subr.bf16.mxu1 %v2754_v53 }
  0xa7   : > { %2379 = vmatprep.subr.bf16.mxu0 %v2378_v45 }
  0xa9   : > { %2396 = vmatpush3.bf16.msra.mxu1 %v2395_v2 }
  0xaa   : > { %2381 = vmatpush1.bf16.msra.mxu0 %v2380_v48  ;;  %2397 = vmatprep.subr.bf16.mxu1 %v2754_v53 }
  0xab   : > { %2275 = vmatprep.subr.mxu0 %v2753_v0 }
  0xad   : > { %423 = vmatmul.mubr.f32.vlgmr.msra.gmra.mrb[0].mxu0 %v309_v49  ;;  %2399 = vmatpush3.bf16.msra.mxu1 %v2398_v5 }
  0xae   : > { %2400 = vmatprep.subr.bf16.mxu1 %v2754_v53  ;;  %2277 = vmatprep.mubr.msk.f32.mxu0 %vm2755_vm0, %v2753_v0 }
  0xb1   : > { %2402 = vmatpush3.bf16.msra.mxu1 %v2401_v8 }
  0xb2   : > { %2403 = vmatprep.subr.bf16.mxu1 %v2754_v53 }
  0xb5   : > { %2405 = vmatpush3.bf16.msra.mxu1 %v2404_v11 }
  0xb6   : > { %2235 = vmatprep.subr.mxu1 %v2753_v0 }
  0xb8   : > { %2233 = vmatmul.mubr.f32.vlgmr.msra.gmra.mrb[0].mxu1 %v309_v49 }
  0xb9   : > { %2237 = vmatprep.mubr.msk.f32.mxu1 %vm2755_vm0, %v2753_v0 }
 0x180   : > { %v424_v12 = vpop.f32.mrb[0].mxu0 }
 0x181   : > { %516 = vrot.lane.b32.xlu1 %v424_v12, %s2756_s27  ;;  %v426_v13 = vpop.f32.mrb[1].mxu0  ;;  %v521_v29 = vmul.f32 %v499_v19, %v424_v12 }
 0x182   : > { %524 = vrot.lane.b32.xlu0 %v426_v13, %s2756_s27  ;;  %v529_v25 = vmul.f32 %v499_v19, %v426_v13  ;;  %s1993_s27 = sshll.u32 %s308_s16, 4  ;;  %s3205_s27 = int_to_ptr.vmem [resolvable:$true] %s1993_s27 }
 0x185   : > { %518 = vrot.lane.b32.xlu1 %v424_v12, %s2757_s29 }
 0x186   : > { %526 = vrot.lane.b32.xlu0 %v426_v13, %s2757_s29  ;;  %s2131_s29 = sshll.u32 %s2822_s25, 7  ;;  %s2765_s25 = smov [#allocation10]  }
 0x187   : > { %s3210_s7 = scalar_lea.hbm %s3258_s6, %s2131_s29  ;;  %s2673_s20 = sshll.u32 %s2765_s25, 4  ;;  %s2674_s20 = int_to_ptr.vmem [resolvable:$false] %s2673_s20 }
 0x188   : > { %p2676_p12 = scmp.lt.s32.totalorder %s3205_s27, %s2674_s20 }
 0x18b   : > { %v3040_v31 = vpop.f32.mrb[0].mxu1 }
 0x18c   : > { %v2234_v32 = vpop.f32.mrb[1].mxu1 }
 0x1f3   : > { %v517_v17 = vpop.permute.xlu1 %516 }
 0x1f4   : > { %v525_v18 = vpop.permute.xlu0 %524 }
 0x1f7   : > { %v519_v21 = vpop.permute.xlu1 %518 }
 0x1f8   : > { %v520_v22 = vsel %vm515_vm1, %v517_v17, %v519_v21  ;;  %v527_v23 = vpop.permute.xlu0 %526 }
 0x1f9   : > { %v528_v24 = vsel %vm515_vm1, %v525_v18, %v527_v23  ;;  %v522_v27 = vmul.f32 %v520_v22, %v500_v20 }
 0x1fa   : > { %v530_v26 = vmul.f32 %v528_v24, %v500_v20 }
 0x1fb   : > { %v3033_v30 = vadd.f32 %v522_v27, %v521_v29 }
 0x1fc   : > { %v3029_v28 = vadd.f32 %v530_v26, %v529_v25 }
 0x1fe   : > { %2236 = vmatpush3.xpose.msk.msra.mxu1 %vm533_vm2, %v3029_v28 }
 0x1ff   : > { %2240 = vmatprep.subr.mxu1 %v2753_v0 }
 0x201   : > { %2238 = vmatmul.mubr.msk.f32.vlgmr.msra.gmra.mrb[2].mxu1 %vm533_vm2, %v3033_v30 }
 0x202   : > { %2242 = vmatprep.mubr.msk.f32.mxu1 %vm2755_vm0, %v2753_v0  ;;  %2241 = vmatpush3.msra.mxu1 %v3040_v31 }
 0x203   : > { %2245 = vmatprep.subr.mxu1 %v2753_v0 }
 0x2d4   : > { %v606_v34 = vpop.f32.mrb[2].mxu1 }
 0x2d5   : > { %v607_v35 = vadd.f32 %v606_v34, %v3047_v33  ;;  %v2239_v36 = vpop.f32.mrb[3].mxu1 }
 0x2d7   : > { %v611_v37 = vsel %vm610_vm3, %v607_v35, -inf }
 0x2d8   : > { %612 = vmax.xlane.f32.xlu0 %v611_v37 }
 0x2ee   : > { %697 = vrot.lane.b32.xlu0 %v3029_v28, %s2758_s9 }
 0x365   : > { %v613_v38 = vpop.xlane.xlu0 %612 }
 0x366   : > { %v614_v39 = vsub.f32 %v607_v35, %v613_v38 }
 0x368   : > { %v615_v40 = vmul.f32 1.442695, %v614_v39 }
 0x369   : > { %v698_v46 = vpop.permute.xlu0 %697 }
 0x36a   : > { %2523 = vpow2.f32 %v615_v40 }
 0x374   : > { %v2524_v41 = vpop.eup %2523 }
 0x375   : > { %v617_v42 = vsel %vm610_vm3, %v2524_v41, 0.0 }
 0x376   : > { %618 = vadd.xlane.f32.xlu1 %v617_v42 }
 0x387   : > { %695 = vrot.lane.b32.xlu1 %v3033_v30, %s2758_s9 }
 0x403   : > { %v619_v43 = vpop.xlane.xlu1 %618 }
 0x404   : > { %2525 = vrcp.f32 %v619_v43 }
 0x407   : > { %v696_v47 = vpop.permute.xlu1 %695 }
 0x40e   : > { %v2526_v44 = vpop.eup %2525 }
 0x40f   : > { %v621_v45 = vmul.f32 %v2526_v44, %v2524_v41 }
 0x411   : > { %2243 = vmatmul.mubr.msk.f32.vlgmr.msra.gmra.mrb[4].mxu1 %vm610_vm3, %v621_v45 }
 0x412   : > { %2246 = vmatpush3.xpose.msk.msra.mxu1 %vm533_vm2, %v698_v46  ;;  %2247 = vmatprep.mubr.msk.f32.mxu1 %vm2755_vm0, %v2753_v0 }
 0x413   : > { %2250 = vmatprep.subr.mxu1 %v2753_v0 }
 0x415   : > { %2248 = vmatmul.mubr.msk.f32.vlgmr.msra.gmra.mrb[6].mxu1 %vm533_vm2, %v696_v47 }
 0x416   : > { %2252 = vmatprep.mubr.msk.f32.mxu1 %vm2755_vm0, %v2753_v0 }
 0x4e4   : > { %v3064_v48 = vpop.f32.mrb[4].mxu1 }
 0x4e5   : > { %v2244_v49 = vpop.f32.mrb[5].mxu1 }
 0x4e8   : > { %v769_v50 = vpop.f32.mrb[6].mxu1 }
 0x4e9   : > { %v770_v51 = vadd.f32 %v769_v50, %v3047_v33  ;;  %v2249_v52 = vpop.f32.mrb[7].mxu1 }
 0x4eb   : > { %v773_v54 = vsel %vm610_vm3, %v770_v51, -inf }
 0x4ec   : > { %774 = vmax.xlane.f32.xlu0 %v773_v54 }
 0x502   : > { %785 = vrot.lane.b32.xlu0 %v3040_v31, %s2758_s9 }
 0x506   : > { %861 = vrot.lane.b32.xlu0 %v3033_v30, %s2759_s13 }
 0x579   : > { %v775_v55 = vpop.xlane.xlu0 %774 }
 0x57a   : > { %v776_v56 = vsub.f32 %v770_v51, %v775_v55 }
 0x57c   : > { %v777_v57 = vmul.f32 1.442695, %v776_v56 }
 0x57d   : > { %v786_v58 = vpop.permute.xlu0 %785 }
 0x57e   : > { %2527 = vpow2.f32 %v777_v57  ;;  %2251 = vmatpush3.msra.mxu1 %v786_v58 }
 0x57f   : > { %2255 = vmatprep.subr.mxu1 %v2753_v0 }
 0x581   : > { %v862_v2 = vpop.permute.xlu0 %861 }
 0x588   : > { %v2528_v59 = vpop.eup %2527 }
 0x589   : > { %v779_v60 = vsel %vm610_vm3, %v2528_v59, 0.0 }
 0x58a   : > { %780 = vadd.xlane.f32.xlu1 %v779_v60 }
 0x59b   : > { %863 = vrot.lane.b32.xlu1 %v3029_v28, %s2759_s13 }
 0x617   : > { %v781_v61 = vpop.xlane.xlu1 %780 }
 0x618   : > { %2529 = vrcp.f32 %v781_v61 }
 0x61b   : > { %v864_v1 = vpop.permute.xlu1 %863 }
 0x622   : > { %v2530_v62 = vpop.eup %2529 }
 0x623   : > { %v783_v63 = vmul.f32 %v2530_v62, %v2528_v59 }
 0x625   : > { %2253 = vmatmul.mubr.msk.f32.vlgmr.msra.gmra.mrb[8].mxu1 %vm610_vm3, %v783_v63 }
 0x626   : > { %2256 = vmatpush3.xpose.msk.msra.mxu1 %vm533_vm2, %v864_v1  ;;  %2257 = vmatprep.mubr.msk.f32.mxu1 %vm2755_vm0, %v2753_v0 }
 0x627   : > { %2260 = vmatprep.subr.mxu1 %v2753_v0 }
 0x629   : > { %2258 = vmatmul.mubr.msk.f32.vlgmr.msra.gmra.mrb[10].mxu1 %vm533_vm2, %v862_v2 }
 0x62a   : > { %2262 = vmatprep.mubr.msk.f32.mxu1 %vm2755_vm0, %v2753_v0 }
 0x6f8   : > { %v3084_v3 = vpop.f32.mrb[8].mxu1 }
 0x6f9   : > { %v2254_v4 = vpop.f32.mrb[9].mxu1 }
 0x6fc   : > { %v935_v5 = vpop.f32.mrb[10].mxu1 }
 0x6fd   : > { %v936_v6 = vadd.f32 %v935_v5, %v3047_v33  ;;  %v2259_v7 = vpop.f32.mrb[11].mxu1 }
 0x6ff   : > { %v939_v8 = vsel %vm610_vm3, %v936_v6, -inf }
 0x700   : > { %940 = vmax.xlane.f32.xlu1 %v939_v8 }
 0x711   : > { %1028 = vrot.lane.b32.xlu1 %v3029_v28, %s2760_s30 }
 0x715   : > { %1026 = vrot.lane.b32.xlu1 %v3033_v30, %s2760_s30 }
 0x719   : > { %1191 = vrot.lane.b32.xlu1 %v3033_v30, %s2761_s14 }
 0x71d   : > { %1356 = vrot.lane.b32.xlu1 %v3033_v30, %s2762_s15 }
 0x721   : > { %1521 = vrot.lane.b32.xlu1 %v3033_v30, %s2763_s17 }
 0x725   : > { %1686 = vrot.lane.b32.xlu1 %v3033_v30, %s2764_s1 }
 0x78d   : > { %v941_v9 = vpop.xlane.xlu1 %940 }
 0x78e   : > { %v942_v10 = vsub.f32 %v936_v6, %v941_v9 }
 0x790   : > { %v943_v11 = vmul.f32 1.442695, %v942_v10 }
 0x791   : > { %v1029_v14 = vpop.permute.xlu1 %1028 }
 0x792   : > { %2531 = vpow2.f32 %v943_v11 }
 0x795   : > { %v1027_v15 = vpop.permute.xlu1 %1026 }
 0x799   : > { %v1192_v18 = vpop.permute.xlu1 %1191 }
 0x79c   : > { %v2532_v12 = vpop.eup %2531 }
 0x79d   : > { %v945_v13 = vsel %vm610_vm3, %v2532_v12, 0.0  ;;  %v1357_v21 = vpop.permute.xlu1 %1356 }
 0x79e   : > { %946 = vadd.xlane.f32.xlu0 %v945_v13 }
 0x7a1   : > { %v1522_v25 = vpop.permute.xlu1 %1521 }
 0x7a5   : > { %v1687_v27 = vpop.permute.xlu1 %1686 }
 0x7b4   : > { %950 = vrot.lane.b32.xlu0 %v3040_v31, %s2759_s13 }
 0x7b8   : > { %1193 = vrot.lane.b32.xlu0 %v3029_v28, %s2761_s14 }
 0x7bc   : > { %1358 = vrot.lane.b32.xlu0 %v3029_v28, %s2762_s15 }
 0x7c0   : > { %1523 = vrot.lane.b32.xlu0 %v3029_v28, %s2763_s17 }
 0x7c4   : > { %1688 = vrot.lane.b32.xlu0 %v3029_v28, %s2764_s1 }
 0x82b   : > { %v947_v16 = vpop.xlane.xlu0 %946 }
 0x82c   : > { %2533 = vrcp.f32 %v947_v16 }
 0x82f   : > { %v951_v17 = vpop.permute.xlu0 %950 }
 0x830   : > { %2261 = vmatpush3.msra.mxu1 %v951_v17 }
 0x831   : > { %2265 = vmatprep.subr.mxu1 %v2753_v0 }
 0x833   : > { %v1194_v19 = vpop.permute.xlu0 %1193 }
 0x834   : > { %2276 = vmatpush3.xpose.msk.msra.mxu0 %vm533_vm2, %v1194_v19 }
 0x835   : > { %2285 = vmatprep.subr.mxu0 %v2753_v0 }
 0x836   : > { %v2534_v20 = vpop.eup %2533 }
 0x837   : > { %v949_v22 = vmul.f32 %v2534_v20, %v2532_v12  ;;  %v1359_v23 = vpop.permute.xlu0 %1358  ;;  %2278 = vmatmul.mubr.msk.f32.vlgmr.msra.gmra.mrb[2].mxu0 %vm533_vm2, %v1192_v18 }
 0x838   : > { %2286 = vmatpush3.xpose.msk.msra.mxu0 %vm533_vm2, %v1359_v23  ;;  %2287 = vmatprep.mubr.msk.f32.mxu0 %vm2755_vm0, %v2753_v0 }
 0x839   : > { %2263 = vmatmul.mubr.msk.f32.vlgmr.msra.gmra.mrb[12].mxu1 %vm610_vm3, %v949_v22  ;;  %2295 = vmatprep.subr.mxu0 %v2753_v0 }
 0x83a   : > { %2266 = vmatpush3.xpose.msk.msra.mxu1 %vm533_vm2, %v1029_v14  ;;  %2267 = vmatprep.mubr.msk.f32.mxu1 %vm2755_vm0, %v2753_v0 }
 0x83b   : > { %v1524_v24 = vpop.permute.xlu0 %1523  ;;  %2288 = vmatmul.mubr.msk.f32.vlgmr.msra.gmra.mrb[4].mxu0 %vm533_vm2, %v1357_v21  ;;  %2270 = vmatprep.subr.mxu1 %v2753_v0 }
 0x83c   : > { %2296 = vmatpush3.xpose.msk.msra.mxu0 %vm533_vm2, %v1524_v24  ;;  %2297 = vmatprep.mubr.msk.f32.mxu0 %vm2755_vm0, %v2753_v0 }
 0x83d   : > { %2268 = vmatmul.mubr.msk.f32.vlgmr.msra.gmra.mrb[14].mxu1 %vm533_vm2, %v1027_v15  ;;  %2305 = vmatprep.subr.mxu0 %v2753_v0 }
 0x83e   : > { %2272 = vmatprep.mubr.msk.f32.mxu1 %vm2755_vm0, %v2753_v0 }
 0x83f   : > { %v1689_v26 = vpop.permute.xlu0 %1688  ;;  %2298 = vmatmul.mubr.msk.f32.vlgmr.msra.gmra.mrb[6].mxu0 %vm533_vm2, %v1522_v25 }
 0x840   : > { %2306 = vmatpush3.xpose.msk.msra.mxu0 %vm533_vm2, %v1689_v26  ;;  %2307 = vmatprep.mubr.msk.f32.mxu0 %vm2755_vm0, %v2753_v0 }
 0x841   : > { %2406 = vmatprep.subr.bf16.mxu0 %v2754_v53 }
 0x843   : > { %2308 = vmatmul.mubr.msk.f32.vlgmr.msra.gmra.mrb[8].mxu0 %vm533_vm2, %v1687_v27 }
 0x844   : > { %2347 = vmatprep.mubr.msk.f32.mxu0 %vm2755_vm0, %v2753_v0 }
 0x90a   : > { %v1265_v28 = vpop.f32.mrb[2].mxu0 }
 0x90b   : > { %v1266_v29 = vadd.f32 %v1265_v28, %v3047_v33  ;;  %v2279_v30 = vpop.f32.mrb[3].mxu0 }
 0x90c   : > { %v3141_v32 = vpop.f32.mrb[12].mxu1 }
 0x90d   : > { %v2264_v34 = vpop.f32.mrb[13].mxu1  ;;  %v1269_v35 = vsel %vm610_vm3, %v1266_v29, -inf }
 0x90e   : > { %1270 = vmax.xlane.f32.xlu1 %v1269_v35  ;;  %v1430_v36 = vpop.f32.mrb[4].mxu0 }
 0x90f   : > { %v2289_v37 = vpop.f32.mrb[5].mxu0  ;;  %v1431_v42 = vadd.f32 %v1430_v36, %v3047_v33  ;;  %v1892_v36 = vld [vmem:[#allocation7] sm:$0xff] }
 0x910   : > { %v1100_v38 = vpop.f32.mrb[14].mxu1  ;;  %v1893_v37 = vld [vmem:[#allocation7 + $0x8] sm:$0xff] }
 0x911   : > { %v1101_v39 = vadd.f32 %v1100_v38, %v3047_v33  ;;  %v2269_v40 = vpop.f32.mrb[15].mxu1  ;;  %v1434_v50 = vsel %vm610_vm3, %v1431_v42, -inf  ;;  %v1894_v38 = vld [vmem:[#allocation7 + $0x10] sm:$0xff] }
 0x912   : > { %v1595_v41 = vpop.f32.mrb[6].mxu0  ;;  %v1895_v40 = vld [vmem:[#allocation7 + $0x18] sm:$0xff] }
 0x913   : > { %v2299_v43 = vpop.f32.mrb[7].mxu0  ;;  %v1104_v44 = vsel %vm610_vm3, %v1101_v39, -inf  ;;  %v1596_v46 = vadd.f32 %v1595_v41, %v3047_v33  ;;  %v2410_v41 = vpack.c.bf16 %v1895_v40, %v1894_v38 }
 0x914   : > { %1105 = vmax.xlane.f32.xlu0 %v1104_v44  ;;  %v1897_v43 = vld [vmem:[#allocation7 + $0x28] sm:$0xff] }
 0x915   : > { %v1599_v52 = vsel %vm610_vm3, %v1596_v46, -inf }
 0x916   : > { %v1760_v45 = vpop.f32.mrb[8].mxu0 }
 0x917   : > { %v1761_v47 = vadd.f32 %v1760_v45, %v3047_v33  ;;  %v2309_v49 = vpop.f32.mrb[9].mxu0  ;;  %v1898_v45 = vld [vmem:[#allocation7 + $0x30] sm:$0xff] }
 0x918   : > { %1435 = vmax.xlane.f32.xlu0 %v1434_v50  ;;  %v1901_v49 = vld [vmem:[#allocation7 + $0x48] sm:$0xff] }
 0x919   : > { %v1764_v51 = vsel %vm610_vm3, %v1761_v47, -inf }
 0x91a   : > { %1765 = vmax.xlane.f32.xlu1 %v1764_v51  ;;  %v1902_v51 = vld [vmem:[#allocation7 + $0x50] sm:$0xff] }
 0x91c   : > { %1600 = vmax.xlane.f32.xlu0 %v1599_v52  ;;  %v1903_v52 = vld [vmem:[#allocation7 + $0x58] sm:$0xff] }
 0x99b   : > { %v1271_v54 = vpop.xlane.xlu1 %1270 }
 0x99c   : > { %v1272_v55 = vsub.f32 %v1266_v29, %v1271_v54  ;;  %v2422_v54 = vpack.c.bf16 %v1903_v52, %v1902_v51 }
 0x99e   : > { %v1273_v56 = vmul.f32 1.442695, %v1272_v55  ;;  %v1904_v55 = vld [vmem:[#allocation7 + $0x60] sm:$0xff] }
 0x9a0   : > { %2535 = vpow2.f32 %v1273_v56  ;;  %v1905_v56 = vld [vmem:[#allocation7 + $0x68] sm:$0xff] }
 0x9a1   : > { %v1106_v57 = vpop.xlane.xlu0 %1105 }
 0x9a2   : > { %v1107_v61 = vsub.f32 %v1101_v39, %v1106_v57  ;;  %v2407_v39 = vpack.c.bf16 %v1893_v37, %v1892_v36  ;;  %v2425_v57 = vpack.c.bf16 %v1905_v56, %v1904_v55 }
 0x9a4   : > { %v1108_v6 = vmul.f32 1.442695, %v1107_v61  ;;  %2408 = vmatpush3.bf16.msra.mxu0 %v2407_v39 }
 0x9a5   : > { %v1436_v58 = vpop.xlane.xlu0 %1435  ;;  %2409 = vmatprep.subr.bf16.mxu0 %v2754_v53 }
 0x9a6   : > { %v1437_v59 = vsub.f32 %v1431_v42, %v1436_v58  ;;  %v1896_v42 = vld [vmem:[#allocation7 + $0x20] sm:$0xff] }
 0x9a7   : > { %v1766_v60 = vpop.xlane.xlu1 %1765  ;;  %v2413_v44 = vpack.c.bf16 %v1897_v43, %v1896_v42 }
 0x9a8   : > { %v1438_v33 = vmul.f32 1.442695, %v1437_v59  ;;  %v1767_v62 = vsub.f32 %v1761_v47, %v1766_v60  ;;  %2411 = vmatpush3.bf16.msra.mxu0 %v2410_v41  ;;  %v1900_v47 = vld [vmem:[#allocation7 + $0x40] sm:$0xff]  ;;  %v1906_v59 = vld [vmem:[#allocation7 + $0x70] sm:$0xff]  ;;  %v1907_v60 = vld [vmem:[#allocation7 + $0x78] sm:$0xff] }
 0x9a9   : > { %v1601_v63 = vpop.xlane.xlu0 %1600  ;;  %2412 = vmatprep.subr.bf16.mxu0 %v2754_v53  ;;  %v2419_v50 = vpack.c.bf16 %v1901_v49, %v1900_v47 }
 0x9aa   : > { %v2536_v1 = vpop.eup %2535  ;;  %2537 = vpow2.f32 %v1438_v33  ;;  %v1768_v2 = vmul.f32 1.442695, %v1767_v62  ;;  %v1602_v4 = vsub.f32 %v1596_v46, %v1601_v63  ;;  %v2428_v33 = vpack.c.bf16 %v1907_v60, %v1906_v59 }
 0x9ab   : > { %v1275_v5 = vsel %vm610_vm3, %v2536_v1, 0.0 }
 0x9ac   : > { %2539 = vpow2.f32 %v1768_v2  ;;  %v1603_v7 = vmul.f32 1.442695, %v1602_v4  ;;  %1276 = vadd.xlane.f32.xlu1 %v1275_v5  ;;  %2414 = vmatpush3.bf16.msra.mxu0 %v2413_v44 }
 0x9ad   : > { %2415 = vmatprep.subr.bf16.mxu0 %v2754_v53 }
 0x9ae   : > { %2541 = vpow2.f32 %v1603_v7 }
 0x9af   : > { %2543 = vpow2.f32 %v1108_v6 }
 0x9b4   : > { %v2538_v8 = vpop.eup %2537 }
 0x9b5   : > { %v1440_v9 = vsel %vm610_vm3, %v2538_v8, 0.0 }
 0x9b6   : > { %v2540_v10 = vpop.eup %2539  ;;  %1441 = vadd.xlane.f32.xlu0 %v1440_v9 }
 0x9b7   : > { %v1770_v12 = vsel %vm610_vm3, %v2540_v10, 0.0 }
 0x9b8   : > { %v2542_v11 = vpop.eup %2541 }
 0x9b9   : > { %v1605_v13 = vsel %vm610_vm3, %v2542_v11, 0.0  ;;  %v2544_v14 = vpop.eup %2543 }
 0x9ba   : > { %1771 = vadd.xlane.f32.xlu0 %v1770_v12  ;;  %1606 = vadd.xlane.f32.xlu1 %v1605_v13  ;;  %v1110_v15 = vsel %vm610_vm3, %v2544_v14, 0.0 }
 0x9be   : > { %1111 = vadd.xlane.f32.xlu0 %v1110_v15 }
 0x9cb   : > { %1115 = vrot.lane.b32.xlu1 %v3040_v31, %s2760_s30 }
 0x9cf   : > { %1445 = vrot.lane.b32.xlu1 %v3040_v31, %s2762_s15 }
 0x9d3   : > { %1610 = vrot.lane.b32.xlu1 %v3040_v31, %s2763_s17 }
 0x9d4   : > { %1280 = vrot.lane.b32.xlu0 %v3040_v31, %s2761_s14 }
 0x9d7   : > { %1852 = vrot.lane.b32.xlu1 %v3084_v3, %s2764_s1 }
 0x9d8   : > { %1775 = vrot.lane.b32.xlu0 %v3040_v31, %s2764_s1 }
 0x9dc   : > { %1856 = vrot.lane.b32.xlu0 %v3141_v32, %s2763_s17 }
 0xa39   : > { %v1277_v16 = vpop.xlane.xlu1 %1276 }
 0xa43   : > { %v1442_v17 = vpop.xlane.xlu0 %1441 }
 0xa47   : > { %v1607_v18 = vpop.xlane.xlu1 %1606  ;;  %v1772_v19 = vpop.xlane.xlu0 %1771 }
 0xa4b   : > { %v1116_v20 = vpop.permute.xlu1 %1115  ;;  %v1112_v21 = vpop.xlane.xlu0 %1111 }
 0xa4c   : > { %2545 = vrcp.f32 %v1112_v21  ;;  %2271 = vmatpush3.msra.mxu1 %v1116_v20 }
 0xa4d   : > { %2280 = vmatprep.subr.mxu1 %v2753_v0  ;;  %2547 = vrcp.f32 %v1277_v16 }
 0xa4e   : > { %2549 = vrcp.f32 %v1442_v17 }
 0xa4f   : > { %2551 = vrcp.f32 %v1607_v18  ;;  %v1281_v31 = vpop.permute.xlu0 %1280  ;;  %v1446_v25 = vpop.permute.xlu1 %1445 }
 0xa50   : > { %2553 = vrcp.f32 %v1772_v19 }
 0xa53   : > { %v1611_v29 = vpop.permute.xlu1 %1610  ;;  %v1776_v34 = vpop.permute.xlu0 %1775 }
 0xa56   : > { %v2546_v22 = vpop.eup %2545 }
 0xa57   : > { %v1114_v3 = vmul.f32 %v2546_v22, %v2544_v14  ;;  %v2548_v23 = vpop.eup %2547  ;;  %v1853_v7 = vpop.permute.xlu1 %1852 }
 0xa58   : > { %v1279_v24 = vmul.f32 %v2548_v23, %v2536_v1  ;;  %v2550_v26 = vpop.eup %2549 }
 0xa59   : > { %2273 = vmatmul.mubr.msk.f32.vlgmr.msra.gmra.mrb[16].mxu1 %vm610_vm3, %v1114_v3  ;;  %v1444_v27 = vmul.f32 %v2550_v26, %v2538_v8  ;;  %v2552_v28 = vpop.eup %2551  ;;  %v1857_v8 = vpop.permute.xlu0 %1856 }
 0xa5a   : > { %2281 = vmatpush3.msra.mxu1 %v1281_v31  ;;  %2282 = vmatprep.mubr.msk.f32.mxu1 %vm2755_vm0, %v2753_v0  ;;  %v1609_v30 = vmul.f32 %v2552_v28, %v2542_v11  ;;  %v2554_v32 = vpop.eup %2553 }
 0xa5b   : > { %2290 = vmatprep.subr.mxu1 %v2753_v0  ;;  %v1774_v35 = vmul.f32 %v2554_v32, %v2540_v10  ;;  %v1879_v10 = vsel %vm533_vm2, %v3064_v48, %v1853_v7 }
 0xa5c   : > { %v1881_v12 = vsel %vm1880_vm4, %v1879_v10, %v1857_v8 }
 0xa5d   : > { %2283 = vmatmul.mubr.msk.f32.vlgmr.msra.gmra.mrb[18].mxu1 %vm610_vm3, %v1279_v24 }
 0xa5e   : > { %2291 = vmatpush3.msra.mxu1 %v1446_v25  ;;  %2292 = vmatprep.mubr.msk.f32.mxu1 %vm2755_vm0, %v2753_v0 }
 0xa5f   : > { %2300 = vmatprep.subr.mxu1 %v2753_v0 }
 0xa61   : > { %2293 = vmatmul.mubr.msk.f32.vlgmr.msra.gmra.mrb[20].mxu1 %vm610_vm3, %v1444_v27 }
 0xa62   : > { %2301 = vmatpush3.msra.mxu1 %v1611_v29  ;;  %2302 = vmatprep.mubr.msk.f32.mxu1 %vm2755_vm0, %v2753_v0 }
 0xa63   : > { %2310 = vmatprep.subr.mxu1 %v2753_v0 }
 0xa65   : > { %2303 = vmatmul.mubr.msk.f32.vlgmr.msra.gmra.mrb[22].mxu1 %vm610_vm3, %v1609_v30 }
 0xa66   : > { %2311 = vmatpush3.msra.mxu1 %v1776_v34  ;;  %2312 = vmatprep.mubr.msk.f32.mxu1 %vm2755_vm0, %v2753_v0  ;;  %v1899_v0 = vld [vmem:[#allocation7 + $0x38] sm:$0xff] }
 0xa67   : > { %v2416_v46 = vpack.c.bf16 %v1899_v0, %v1898_v45 }
 0xa69   : > { %2313 = vmatmul.mubr.msk.f32.vlgmr.msra.gmra.mrb[24].mxu1 %vm610_vm3, %v1774_v35  ;;  %2417 = vmatpush3.bf16.msra.mxu0 %v2416_v46 }
 0xa6a   : > { %2418 = vmatprep.subr.bf16.mxu0 %v2754_v53 }
 0xa6d   : > { %2420 = vmatpush3.bf16.msra.mxu0 %v2419_v50 }
 0xa6e   : > { %2421 = vmatprep.subr.bf16.mxu0 %v2754_v53 }
 0xa71   : > { %2423 = vmatpush3.bf16.msra.mxu0 %v2422_v54 }
 0xa72   : > { %2424 = vmatprep.subr.bf16.mxu0 %v2754_v53 }
 0xa75   : > { %2426 = vmatpush3.bf16.msra.mxu0 %v2425_v57 }
 0xa76   : > { %2427 = vmatprep.subr.bf16.mxu0 %v2754_v53 }
 0xa79   : > { %2429 = vmatpush3.bf16.msra.mxu0 %v2428_v33 }
 0xb2c   : > { %v1187_v58 = vpop.f32.mrb[16].mxu1 }
 0xb2d   : > { %1860 = vrot.lane.b32.xlu1 %v1187_v58, %s2762_s15  ;;  %v2274_v61 = vpop.f32.mrb[17].mxu1 }
 0xb30   : > { %v1352_v62 = vpop.f32.mrb[18].mxu1 }
 0xb31   : > { %1864 = vrot.lane.b32.xlu0 %v1352_v62, %s2761_s14  ;;  %v2284_v63 = vpop.f32.mrb[19].mxu1 }
 0xb34   : > { %v1517_v1 = vpop.f32.mrb[20].mxu1 }
 0xb35   : > { %1868 = vrot.lane.b32.xlu1 %v1517_v1, %s2760_s30  ;;  %v2294_v2 = vpop.f32.mrb[21].mxu1 }
 0xb38   : > { %v1682_v4 = vpop.f32.mrb[22].mxu1 }
 0xb39   : > { %1872 = vrot.lane.b32.xlu0 %v1682_v4, %s2759_s13  ;;  %v2304_v5 = vpop.f32.mrb[23].mxu1  ;;  %s2675_s13 = scalar_lea.vmem %s2674_s20, 256 }
 0xb3c   : > { %v1847_v53 = vpop.f32.mrb[24].mxu1 }
 0xb3d   : > { %1876 = vrot.lane.b32.xlu1 %v1847_v53, %s2758_s9  ;;  %v2314_v6 = vpop.f32.mrb[25].mxu1  ;;  %s2669_s9 = scalar_lea.vmem %s3205_s27, 128 }
 0xb3e   : > { %p2670_p10 = scmp.ne.s32.totalorder %s3205_s27, %s2669_s9  ;;  %p2677_p2 = scmp.lt.s32.totalorder %s2675_s13, %s2669_s9 }
 0xb40   : > { %p2671_p3 = pnand %p2670_p10, %p2943_p5  ;;  %p2678_p1 = por %p2677_p2, %p2676_p12 }
 0xb42   : > { %p2672_p7 = pneg %p2671_p3 }
 0xb44   : > { %p2679_p4 = pnand %p2678_p1, %p2672_p7 }
 0xb9f   : > { %v1861_v9 = vpop.permute.xlu1 %1860 }
 0xba0   : > { %v1883_v14 = vsel %vm1882_vm5, %v1881_v12, %v1861_v9 }
 0xba3   : > { %v1865_v11 = vpop.permute.xlu0 %1864 }
 0xba4   : > { %v1885_v16 = vsel %vm1884_vm6, %v1883_v14, %v1865_v11 }
 0xba7   : > { %v1869_v13 = vpop.permute.xlu1 %1868 }
 0xba8   : > { %v1887_v17 = vsel %vm1886_vm7, %v1885_v16, %v1869_v13 }
 0xbab   : > { %v1873_v15 = vpop.permute.xlu0 %1872 }
 0xbac   : > { %v1889_v18 = vsel %vm1888_vm8, %v1887_v17, %v1873_v15 }
 0xbaf   : > { %v1877_v19 = vpop.permute.xlu1 %1876 }
 0xbb0   : > { %v1891_v48 = vsel %vm1890_vm9, %v1889_v18, %v1877_v19 }
 0xbb1   : > { %2348 = vmatmul.mubr.f32.vlgmr.msra.gmra.mrb[10].mxu0 %v1891_v48 }
 0xc84   : > { %v1974_v20 = vpop.f32.mrb[10].mxu0 }
 0xc85   : > { %1978 = vst [vmem:[%s308_s16] sm:$0xff] %v1974_v20  ;;  %v2349_v21 = vpop.f32.mrb[11].mxu0 }
 0xc86   : > { %2682 = shalt.err (!%p2679_p4)
}
 0xc87   : > { %s2683_s19 = scalar_lea.hbm %s3210_s7, 128  ;;  %s2687_s15 = scalar_lea.hbm %s3258_s6, 256 }
 0xc88   : > { %p2684_p0 = scmp.ne.s32.totalorder %s3210_s7, %s2683_s19  ;;  %p2688_p8 = scmp.lt.u32.totalorder %s3210_s7, %s3258_s6 }
 0xc89   : > { %p2689_p13 = scmp.lt.u32.totalorder %s2687_s15, %s2683_s19  ;;  %p2691_p10 = scmp.lt.u32.totalorder %s2683_s19, %s3210_s7 }
 0xc8a   : > { %p2685_p9 = pnand %p2684_p0, %p2943_p5 }
 0xc8b   : > { %p2690_p6 = por %p2689_p13, %p2688_p8 }
 0xc8c   : > { %p2686_p11 = pneg %p2685_p9 }
 0xc8d   : > { %p2692_p3 = por %p2691_p10, %p2690_p6 }
 0xc8f   : > { %p2693_p7 = pnand %p2692_p3, %p2686_p11 }
 0xc91   : > { %2696 = shalt.err (!%p2693_p7)
}
 0xc92   : > { %2444 = dma.vmem_to_hbm [thread:$0]  (%p2943_p5), %s3205_s27, 128, %s3210_s7, %s1980_s10  }
 0xc93 PF: > { %s2005_s16 = sand.u32 1, %s2731_s21   ;;  %p3278_p12 = scmp.ne.s32.totalorder %s3264_s28, 0 }
 0xc94   : > { %p3279_p2 = scmp.ge.s32.totalorder %s2743_s24, 2  ;;  %s2006_s29 = scalar_lea.sflag [#allocation4], %s2005_s16 }
 0xc96   : > { %p2461_p1 = pnand %p3279_p2, %p3278_p12 }
 0xc98   : > { %2726 = dma.done.wait (!%p2461_p1), %s2006_s29, 128  }
 0xc99   : > { %2728 = vsyncadd (!%p2461_p1), %s2006_s29, 4294967168  ;;  %p21_p4 = scmp.ge.s32.totalorder %s2911_s12, 4   ;;  %s3280_s21 = smov %s2735_s22 }
 0xc9a   : > { %s3281_s22 = smov %s2739_s23  ;;  %s3282_s23 = smov %s2939_s8 }
 0xc9b   : > { %s3283_s24 = smov %s2911_s12  ;;  %23 = sbr.rel (!%p21_p4) target bundleno = 9 (0x9), region = 101 }
 0xca2   :  { %2011 = vsyncpa [#allocation3], 1 }
 0xca3   :  { %2013 = vsyncpa [#allocation3 + $0x1], 1 }
 0xca4   :  { %2014 = vsyncpa [#allocation6], 1 }
 0xca5   :  { %2015 = vsyncpa [#allocation9], 1 }
 0xca6   :  { %2016 = vsyncpa [#allocation4], 1 }
 0xca7   :  { %2018 = vsyncpa [#allocation4 + $0x1], 1 }

</bundles_post_ra>
